<compile_context>
chip_gen: v5e
topology: v5e:2x2
jax: 0.10.0
libtpu: 0.0.40
codegen_flags: <defaults>
</compile_context>

<pallas_src>
import jax
import jax.numpy as jnp
from jax import lax
from jax.experimental import pallas as pl
from jax.experimental.pallas import tpu as pltpu


# --------------------------- fused kernel ---------------------------

def _acwcd_fused_kernel(c41t_ref, c42t_ref, w1t_ref, b1t_ref, w2t_ref, b2t_ref,
                        wct_ref, a11_ref, a12_ref, a21_ref, a22_ref,
                        aw_ref, ab_ref,
                        segt_ref, clst_ref, attn_ref):
    C4, BHW = c41t_ref.shape
    B, HEADS, N, _ = a11_ref.shape
    HW = BHW // B

    # ---- _c4 = |c4_1 - c4_2|  (channel-major, lane dim = B*H*W) ----
    d_t = jnp.abs(c41t_ref[...] - c42t_ref[...])                        # (C4, B*H*W)

    # ---- seg = decoder(_c4): 1x1 conv -> ReLU -> 1x1 conv, lane-dense ----
    h_t = jnp.maximum(
        jnp.dot(w1t_ref[...], d_t, preferred_element_type=jnp.float32)
        + b1t_ref[...], 0.0)                                            # (E, B*H*W)
    segt_ref[...] = (jnp.dot(w2t_ref[...], h_t,
                             preferred_element_type=jnp.float32)
                     + b2t_ref[...])                                    # (NC, B*H*W)

    # ---- cls = classifier(GAP(_c4)): block-diagonal pooling matmul ----
    col = lax.broadcasted_iota(jnp.int32, (BHW, B), 0)
    bid = lax.broadcasted_iota(jnp.int32, (BHW, B), 1)
    pool = jnp.where((col >= bid * HW) & (col < (bid + 1) * HW),
                     1.0 / HW, 0.0).astype(jnp.float32)                 # (B*H*W, B)
    pooled_t = jnp.dot(d_t, pool, preferred_element_type=jnp.float32)   # (C4, B)
    clst_ref[...] = jnp.dot(wct_ref[...], pooled_t,
                            preferred_element_type=jnp.float32)         # (NC-1, B)

    # ---- change_attn = sigmoid(attn_proj(|a1-a2| + |a1-a2|^T)) ----
    # attn_proj is a per-channel 1x1 conv, so proj(d + d^T) = proj(d) + proj(d)^T.
    dA = jnp.abs(a11_ref[...] - a21_ref[...])                           # (B, HEADS, N, N)
    dB = jnp.abs(a12_ref[...] - a22_ref[...])
    bias = ab_ref[0, 0]                                                 # SMEM scalar
    for b in range(B):                                                  # static unroll
        s = jnp.zeros((N, N), jnp.float32)
        for c in range(HEADS):                                          # 16 VPU FMAs
            s = s + aw_ref[0, c] * dA[b, c]
            s = s + aw_ref[0, HEADS + c] * dB[b, c]
        attn_ref[b] = jax.nn.sigmoid(s + s.T + bias)


# --------------------------- wrapper ---------------------------

def acwcd_forward(c4_1, c4_2, attns1, attns2, params):
    """Returns (cls, seg, change_attn) matching ACWCD.forward(pooling='gap')."""
    B, H, W, C4 = c4_1.shape
    E = params["seg_w1"].shape[-1]
    NC = params["seg_w2"].shape[-1]
    NCm1 = params["cls_w"].shape[-1]
    _, HEADS, N, _ = attns1[0].shape
    BHW = B * H * W

    # Free HBM-level reshape/transpose: present features channel-major so every
    # in-kernel tensor is lane-dense (lane dim = B*H*W) with no in-kernel relayout.
    c41_t = c4_1.reshape(BHW, C4).T                     # (C4, B*H*W)
    c42_t = c4_2.reshape(BHW, C4).T
    w1_t = params["seg_w1"].T                           # (E, C4)
    b1_t = params["seg_b1"].T                           # (E, 1)
    w2_t = params["seg_w2"].T                           # (NC, E)
    b2_t = params["seg_b2"].T                           # (NC, 1)
    wc_t = params["cls_w"].T                            # (NC-1, C4)

    flops = int(2 * BHW * (C4 * E + E * NC + C4 * B)
                + 2 * NCm1 * C4 * B
                + 4 * BHW * C4
                + 4 * B * 2 * HEADS * N * N)
    bytes_accessed = int(
        2 * BHW * C4 * 4
        + 4 * B * HEADS * N * N * 4
        + (w1_t.size + b1_t.size + w2_t.size + b2_t.size + wc_t.size
           + params["attn_w"].size + params["attn_b"].size) * 4
        + (NC * BHW + NCm1 * B + B * N * N) * 4)

    def vmem():
        return pl.BlockSpec(memory_space=pltpu.MemorySpace.VMEM)

    def smem():
        return pl.BlockSpec(memory_space=pltpu.MemorySpace.SMEM)

    seg_t, cls_t, change_attn = pl.pallas_call(
        _acwcd_fused_kernel,
        out_shape=(jax.ShapeDtypeStruct((NC, BHW), jnp.float32),    # seg^T (lane-dense)
                   jax.ShapeDtypeStruct((NCm1, B), jnp.float32),    # cls^T
                   jax.ShapeDtypeStruct((B, N, N), jnp.float32)),   # change_attn
        in_specs=[vmem() for _ in range(11)] + [smem(), smem()],
        out_specs=(vmem(), vmem(), vmem()),
        cost_estimate=pl.CostEstimate(flops=flops,
                                      transcendentals=B * N * N,
                                      bytes_accessed=bytes_accessed),
    )(c41_t, c42_t, w1_t, b1_t, w2_t, b2_t, wc_t,
      attns1[0], attns1[1], attns2[0], attns2[1],
      params["attn_w"], params["attn_b"])

    seg = seg_t.T.reshape(B, H, W, NC)                  # back to NHWC
    cls = cls_t.T                                       # (B, num_classes - 1)
    return cls, seg, change_attn


# --------------------------- reference (plain JAX) ---------------------------

def _reference(c4_1, c4_2, attns1, attns2, params):
    d = jnp.abs(c4_1 - c4_2)
    B, H, W, C4 = d.shape
    d2 = d.reshape(B, H * W, C4)
    h = jnp.maximum(d2 @ params["seg_w1"] + params["seg_b1"], 0.0)
    seg = (h @ params["seg_w2"] + params["seg_b2"]).reshape(B, H, W, -1)
    cls = d2.mean(axis=1) @ params["cls_w"]
    a1 = jnp.concatenate(attns1, axis=1)
    a2 = jnp.concatenate(attns2, axis=1)
    da = jnp.abs(a1 - a2)
    cat = da + jnp.transpose(da, (0, 1, 3, 2))
    s = jnp.einsum("bcij,c->bij", cat, params["attn_w"][0]) + params["attn_b"][0, 0]
    return cls, seg, jax.nn.sigmoid(s)


# --------------------------- main ---------------------------

if __name__ == "__main__":
    B, H, W = 2, 8, 8          # stage-4 feature map
    C4 = 32                    # in_channels[3]
    E = 16                     # embedding_dim (small)
    NUM_CLASSES = 3            # classifier has NUM_CLASSES - 1 outputs
    N = 16                     # attention tokens (N x N attention matrices)
    HEADS = 8                  # 2 attention maps x 8 heads -> 16 channels

    key = jax.random.PRNGKey(0)
    ks = jax.random.split(key, 12)

    params = {
        "seg_w1": jax.random.normal(ks[0], (C4, E), jnp.float32) * 0.1,
        "seg_b1": jax.random.normal(ks[1], (1, E), jnp.float32) * 0.01,
        "seg_w2": jax.random.normal(ks[2], (E, NUM_CLASSES), jnp.float32) * 0.1,
        "seg_b2": jax.random.normal(ks[3], (1, NUM_CLASSES), jnp.float32) * 0.01,
        "cls_w": jax.random.normal(ks[4], (C4, NUM_CLASSES - 1), jnp.float32) * 0.1,
        "attn_w": jax.random.normal(ks[5], (1, 16), jnp.float32) * 0.1,   # attn_proj weight
        "attn_b": jax.random.normal(ks[6], (1, 1), jnp.float32) * 0.01,   # attn_proj bias
    }

    # Encoder outputs (stage-4 features + last two attention maps) for each image.
    c4_1 = jax.random.normal(ks[7], (B, H, W, C4), jnp.float32)
    c4_2 = jax.random.normal(ks[8], (B, H, W, C4), jnp.float32)
    attns1 = [jax.random.uniform(ks[9], (B, HEADS, N, N), jnp.float32),
              jax.random.uniform(ks[10], (B, HEADS, N, N), jnp.float32)]
    attns2 = [jax.random.uniform(ks[11], (B, HEADS, N, N), jnp.float32),
              jax.random.uniform(ks[0], (B, HEADS, N, N), jnp.float32)]

    cls, seg, change_attn = acwcd_forward(c4_1, c4_2, attns1, attns2, params)
    jax.block_until_ready((cls, seg, change_attn))

    cls_r, seg_r, ca_r = _reference(c4_1, c4_2, attns1, attns2, params)
    assert cls.shape == (B, NUM_CLASSES - 1)
    assert seg.shape == (B, H, W, NUM_CLASSES)
    assert change_attn.shape == (B, N, N)
    assert jnp.allclose(cls, cls_r, atol=1e-4, rtol=1e-4)
    assert jnp.allclose(seg, seg_r, atol=1e-4, rtol=1e-4)
    assert jnp.allclose(change_attn, ca_r, atol=1e-4, rtol=1e-4)

    print("KERNEL_OK")
</pallas_src>

<mosaic_0001>
module attributes {stable_mosaic.version = 11 : i64} {
  func.func @_acwcd_fused_kernel(%arg0: memref<32x128xf32, #tpu.memory_space<vmem>>, %arg1: memref<32x128xf32, #tpu.memory_space<vmem>>, %arg2: memref<16x32xf32, #tpu.memory_space<vmem>>, %arg3: memref<16x1xf32, #tpu.memory_space<vmem>>, %arg4: memref<3x16xf32, #tpu.memory_space<vmem>>, %arg5: memref<3x1xf32, #tpu.memory_space<vmem>>, %arg6: memref<2x32xf32, #tpu.memory_space<vmem>>, %arg7: memref<2x8x16x16xf32, #tpu.memory_space<vmem>>, %arg8: memref<2x8x16x16xf32, #tpu.memory_space<vmem>>, %arg9: memref<2x8x16x16xf32, #tpu.memory_space<vmem>>, %arg10: memref<2x8x16x16xf32, #tpu.memory_space<vmem>>, %arg11: memref<1x16xf32, #tpu.memory_space<smem>>, %arg12: memref<1x1xf32, #tpu.memory_space<smem>>, %arg13: memref<3x128xf32, #tpu.memory_space<vmem>>, %arg14: memref<2x2xf32, #tpu.memory_space<vmem>>, %arg15: memref<2x16x16xf32, #tpu.memory_space<vmem>>) attributes {dimension_semantics = [], scalar_prefetch = 0 : i64, scratch_operands = 0 : i64, tpu.core_type = #tpu.core_type<tc>} {
    %c0 = arith.constant 0 : index
    %c0_0 = arith.constant 0 : index
    %0 = vector.load %arg0[%c0, %c0_0] : memref<32x128xf32, #tpu.memory_space<vmem>>, vector<32x128xf32>
    %c0_1 = arith.constant 0 : index
    %c0_2 = arith.constant 0 : index
    %1 = vector.load %arg1[%c0_1, %c0_2] : memref<32x128xf32, #tpu.memory_space<vmem>>, vector<32x128xf32>
    %2 = arith.subf %0, %1 : vector<32x128xf32>
    %3 = math.absf %2 : vector<32x128xf32>
    %c0_3 = arith.constant 0 : index
    %c0_4 = arith.constant 0 : index
    %4 = vector.load %arg2[%c0_3, %c0_4] : memref<16x32xf32, #tpu.memory_space<vmem>>, vector<16x32xf32>
    %cst = arith.constant dense<0.000000e+00> : vector<16x128xf32>
    %5 = tpu.matmul %4, %3, %cst {dimension_numbers = #tpu.dot_dimension_numbers<[1], [0], [0], [1], [0, 0, 1, 1], [], []>} : vector<16x32xf32>, vector<32x128xf32>, vector<16x128xf32> -> vector<16x128xf32>
    %c0_5 = arith.constant 0 : index
    %c0_6 = arith.constant 0 : index
    %6 = vector.load %arg3[%c0_5, %c0_6] : memref<16x1xf32, #tpu.memory_space<vmem>>, vector<16x1xf32>
    %7 = vector.broadcast %6 : vector<16x1xf32> to vector<16x128xf32>
    %8 = arith.addf %5, %7 : vector<16x128xf32>
    %cst_7 = arith.constant 0.000000e+00 : f32
    %9 = vector.broadcast %cst_7 : f32 to vector<16x128xf32>
    %10 = arith.maximumf %8, %9 : vector<16x128xf32>
    %c0_8 = arith.constant 0 : index
    %c0_9 = arith.constant 0 : index
    %11 = vector.load %arg4[%c0_8, %c0_9] : memref<3x16xf32, #tpu.memory_space<vmem>>, vector<3x16xf32>
    %cst_10 = arith.constant dense<0.000000e+00> : vector<3x128xf32>
    %12 = tpu.matmul %11, %10, %cst_10 {dimension_numbers = #tpu.dot_dimension_numbers<[1], [0], [0], [1], [0, 0, 1, 1], [], []>} : vector<3x16xf32>, vector<16x128xf32>, vector<3x128xf32> -> vector<3x128xf32>
    %c0_11 = arith.constant 0 : index
    %c0_12 = arith.constant 0 : index
    %13 = vector.load %arg5[%c0_11, %c0_12] : memref<3x1xf32, #tpu.memory_space<vmem>>, vector<3x1xf32>
    %14 = vector.broadcast %13 : vector<3x1xf32> to vector<3x128xf32>
    %15 = arith.addf %12, %14 : vector<3x128xf32>
    %c0_13 = arith.constant 0 : index
    %c0_14 = arith.constant 0 : index
    %16 = vector.load %arg13[%c0_13, %c0_14] : memref<3x128xf32, #tpu.memory_space<vmem>>, vector<3x128xf32>
    tpu.vector_store %arg13[%c0_13, %c0_14], %15 {strides = array<i32>} : memref<3x128xf32, #tpu.memory_space<vmem>>, vector<3x128xf32>,
    %17 = tpu.iota {dimensions = array<i32: 0>} : vector<128x2xi32>
    %18 = tpu.iota {dimensions = array<i32: 1>} : vector<128x2xi32>
    %c64_i32 = arith.constant 64 : i32
    %19 = vector.broadcast %c64_i32 : i32 to vector<128x2xi32>
    %20 = arith.muli %18, %19 : vector<128x2xi32>
    %21 = arith.cmpi sge, %17, %20 : vector<128x2xi32>
    %c1_i32 = arith.constant 1 : i32
    %22 = vector.broadcast %c1_i32 : i32 to vector<128x2xi32>
    %23 = arith.addi %18, %22 : vector<128x2xi32>
    %c64_i32_15 = arith.constant 64 : i32
    %24 = vector.broadcast %c64_i32_15 : i32 to vector<128x2xi32>
    %25 = arith.muli %23, %24 : vector<128x2xi32>
    %26 = arith.cmpi slt, %17, %25 : vector<128x2xi32>
    %27 = arith.andi %21, %26 : vector<128x2xi1>
    %cst_16 = arith.constant 1.562500e-02 : f32
    %cst_17 = arith.constant 0.000000e+00 : f32
    %28 = vector.broadcast %cst_16 : f32 to vector<128x2xf32>
    %29 = vector.broadcast %cst_17 : f32 to vector<128x2xf32>
    %30 = arith.select %27, %28, %29 : vector<128x2xi1>, vector<128x2xf32>
    %cst_18 = arith.constant dense<0.000000e+00> : vector<32x2xf32>
    %31 = tpu.matmul %3, %30, %cst_18 {dimension_numbers = #tpu.dot_dimension_numbers<[1], [0], [0], [1], [0, 0, 1, 1], [], []>} : vector<32x128xf32>, vector<128x2xf32>, vector<32x2xf32> -> vector<32x2xf32>
    %c0_19 = arith.constant 0 : index
    %c0_20 = arith.constant 0 : index
    %32 = vector.load %arg6[%c0_19, %c0_20] : memref<2x32xf32, #tpu.memory_space<vmem>>, vector<2x32xf32>
    %cst_21 = arith.constant dense<0.000000e+00> : vector<2x2xf32>
    %33 = tpu.matmul %32, %31, %cst_21 {dimension_numbers = #tpu.dot_dimension_numbers<[1], [0], [0], [1], [0, 0, 1, 1], [], []>} : vector<2x32xf32>, vector<32x2xf32>, vector<2x2xf32> -> vector<2x2xf32>
    %c0_22 = arith.constant 0 : index
    %c0_23 = arith.constant 0 : index
    %34 = vector.load %arg14[%c0_22, %c0_23] : memref<2x2xf32, #tpu.memory_space<vmem>>, vector<2x2xf32>
    tpu.vector_store %arg14[%c0_22, %c0_23], %33 {strides = array<i32>} : memref<2x2xf32, #tpu.memory_space<vmem>>, vector<2x2xf32>,
    %c0_24 = arith.constant 0 : index
    %c0_25 = arith.constant 0 : index
    %c0_26 = arith.constant 0 : index
    %c0_27 = arith.constant 0 : index
    %35 = vector.load %arg7[%c0_24, %c0_25, %c0_26, %c0_27] : memref<2x8x16x16xf32, #tpu.memory_space<vmem>>, vector<2x8x16x16xf32>
    %c0_28 = arith.constant 0 : index
    %c0_29 = arith.constant 0 : index
    %c0_30 = arith.constant 0 : index
    %c0_31 = arith.constant 0 : index
    %36 = vector.load %arg9[%c0_28, %c0_29, %c0_30, %c0_31] : memref<2x8x16x16xf32, #tpu.memory_space<vmem>>, vector<2x8x16x16xf32>
    %37 = arith.subf %35, %36 : vector<2x8x16x16xf32>
    %38 = math.absf %37 : vector<2x8x16x16xf32>
    %c0_32 = arith.constant 0 : index
    %c0_33 = arith.constant 0 : index
    %c0_34 = arith.constant 0 : index
    %c0_35 = arith.constant 0 : index
    %39 = vector.load %arg8[%c0_32, %c0_33, %c0_34, %c0_35] : memref<2x8x16x16xf32, #tpu.memory_space<vmem>>, vector<2x8x16x16xf32>
    %c0_36 = arith.constant 0 : index
    %c0_37 = arith.constant 0 : index
    %c0_38 = arith.constant 0 : index
    %c0_39 = arith.constant 0 : index
    %40 = vector.load %arg10[%c0_36, %c0_37, %c0_38, %c0_39] : memref<2x8x16x16xf32, #tpu.memory_space<vmem>>, vector<2x8x16x16xf32>
    %41 = arith.subf %39, %40 : vector<2x8x16x16xf32>
    %42 = math.absf %41 : vector<2x8x16x16xf32>
    %c0_40 = arith.constant 0 : index
    %c0_41 = arith.constant 0 : index
    %43 = memref.load %arg12[%c0_40, %c0_41] : memref<1x1xf32, #tpu.memory_space<smem>>
    %cst_42 = arith.constant 0.000000e+00 : f32
    %44 = vector.broadcast %cst_42 : f32 to vector<16x16xf32>
    %c0_43 = arith.constant 0 : index
    %c0_44 = arith.constant 0 : index
    %45 = memref.load %arg11[%c0_43, %c0_44] : memref<1x16xf32, #tpu.memory_space<smem>>
    %46 = vector.extract_strided_slice %38 {offsets = [0, 0, 0, 0], sizes = [1, 1, 16, 16], strides = [1, 1, 1, 1]} : vector<2x8x16x16xf32> to vector<1x1x16x16xf32>
    %47 = vector.shape_cast %46 : vector<1x1x16x16xf32> to vector<16x16xf32>
    %48 = vector.broadcast %45 : f32 to vector<16x16xf32>
    %49 = arith.mulf %48, %47 : vector<16x16xf32>
    %50 = arith.addf %44, %49 : vector<16x16xf32>
    %c0_45 = arith.constant 0 : index
    %c8 = arith.constant 8 : index
    %51 = memref.load %arg11[%c0_45, %c8] : memref<1x16xf32, #tpu.memory_space<smem>>
    %52 = vector.extract_strided_slice %42 {offsets = [0, 0, 0, 0], sizes = [1, 1, 16, 16], strides = [1, 1, 1, 1]} : vector<2x8x16x16xf32> to vector<1x1x16x16xf32>
    %53 = vector.shape_cast %52 : vector<1x1x16x16xf32> to vector<16x16xf32>
    %54 = vector.broadcast %51 : f32 to vector<16x16xf32>
    %55 = arith.mulf %54, %53 : vector<16x16xf32>
    %56 = arith.addf %50, %55 : vector<16x16xf32>
    %c0_46 = arith.constant 0 : index
    %c1 = arith.constant 1 : index
    %57 = memref.load %arg11[%c0_46, %c1] : memref<1x16xf32, #tpu.memory_space<smem>>
    %58 = vector.extract_strided_slice %38 {offsets = [0, 1, 0, 0], sizes = [1, 1, 16, 16], strides = [1, 1, 1, 1]} : vector<2x8x16x16xf32> to vector<1x1x16x16xf32>
    %59 = vector.shape_cast %58 : vector<1x1x16x16xf32> to vector<16x16xf32>
    %60 = vector.broadcast %57 : f32 to vector<16x16xf32>
    %61 = arith.mulf %60, %59 : vector<16x16xf32>
    %62 = arith.addf %56, %61 : vector<16x16xf32>
    %c0_47 = arith.constant 0 : index
    %c9 = arith.constant 9 : index
    %63 = memref.load %arg11[%c0_47, %c9] : memref<1x16xf32, #tpu.memory_space<smem>>
    %64 = vector.extract_strided_slice %42 {offsets = [0, 1, 0, 0], sizes = [1, 1, 16, 16], strides = [1, 1, 1, 1]} : vector<2x8x16x16xf32> to vector<1x1x16x16xf32>
    %65 = vector.shape_cast %64 : vector<1x1x16x16xf32> to vector<16x16xf32>
    %66 = vector.broadcast %63 : f32 to vector<16x16xf32>
    %67 = arith.mulf %66, %65 : vector<16x16xf32>
    %68 = arith.addf %62, %67 : vector<16x16xf32>
    %c0_48 = arith.constant 0 : index
    %c2 = arith.constant 2 : index
    %69 = memref.load %arg11[%c0_48, %c2] : memref<1x16xf32, #tpu.memory_space<smem>>
    %70 = vector.extract_strided_slice %38 {offsets = [0, 2, 0, 0], sizes = [1, 1, 16, 16], strides = [1, 1, 1, 1]} : vector<2x8x16x16xf32> to vector<1x1x16x16xf32>
    %71 = vector.shape_cast %70 : vector<1x1x16x16xf32> to vector<16x16xf32>
    %72 = vector.broadcast %69 : f32 to vector<16x16xf32>
    %73 = arith.mulf %72, %71 : vector<16x16xf32>
    %74 = arith.addf %68, %73 : vector<16x16xf32>
    %c0_49 = arith.constant 0 : index
    %c10 = arith.constant 10 : index
    %75 = memref.load %arg11[%c0_49, %c10] : memref<1x16xf32, #tpu.memory_space<smem>>
    %76 = vector.extract_strided_slice %42 {offsets = [0, 2, 0, 0], sizes = [1, 1, 16, 16], strides = [1, 1, 1, 1]} : vector<2x8x16x16xf32> to vector<1x1x16x16xf32>
    %77 = vector.shape_cast %76 : vector<1x1x16x16xf32> to vector<16x16xf32>
    %78 = vector.broadcast %75 : f32 to vector<16x16xf32>
    %79 = arith.mulf %78, %77 : vector<16x16xf32>
    %80 = arith.addf %74, %79 : vector<16x16xf32>
    %c0_50 = arith.constant 0 : index
    %c3 = arith.constant 3 : index
    %81 = memref.load %arg11[%c0_50, %c3] : memref<1x16xf32, #tpu.memory_space<smem>>
    %82 = vector.extract_strided_slice %38 {offsets = [0, 3, 0, 0], sizes = [1, 1, 16, 16], strides = [1, 1, 1, 1]} : vector<2x8x16x16xf32> to vector<1x1x16x16xf32>
    %83 = vector.shape_cast %82 : vector<1x1x16x16xf32> to vector<16x16xf32>
    %84 = vector.broadcast %81 : f32 to vector<16x16xf32>
    %85 = arith.mulf %84, %83 : vector<16x16xf32>
    %86 = arith.addf %80, %85 : vector<16x16xf32>
    %c0_51 = arith.constant 0 : index
    %c11 = arith.constant 11 : index
    %87 = memref.load %arg11[%c0_51, %c11] : memref<1x16xf32, #tpu.memory_space<smem>>
    %88 = vector.extract_strided_slice %42 {offsets = [0, 3, 0, 0], sizes = [1, 1, 16, 16], strides = [1, 1, 1, 1]} : vector<2x8x16x16xf32> to vector<1x1x16x16xf32>
    %89 = vector.shape_cast %88 : vector<1x1x16x16xf32> to vector<16x16xf32>
    %90 = vector.broadcast %87 : f32 to vector<16x16xf32>
    %91 = arith.mulf %90, %89 : vector<16x16xf32>
    %92 = arith.addf %86, %91 : vector<16x16xf32>
    %c0_52 = arith.constant 0 : index
    %c4 = arith.constant 4 : index
    %93 = memref.load %arg11[%c0_52, %c4] : memref<1x16xf32, #tpu.memory_space<smem>>
    %94 = vector.extract_strided_slice %38 {offsets = [0, 4, 0, 0], sizes = [1, 1, 16, 16], strides = [1, 1, 1, 1]} : vector<2x8x16x16xf32> to vector<1x1x16x16xf32>
    %95 = vector.shape_cast %94 : vector<1x1x16x16xf32> to vector<16x16xf32>
    %96 = vector.broadcast %93 : f32 to vector<16x16xf32>
    %97 = arith.mulf %96, %95 : vector<16x16xf32>
    %98 = arith.addf %92, %97 : vector<16x16xf32>
    %c0_53 = arith.constant 0 : index
    %c12 = arith.constant 12 : index
    %99 = memref.load %arg11[%c0_53, %c12] : memref<1x16xf32, #tpu.memory_space<smem>>
    %100 = vector.extract_strided_slice %42 {offsets = [0, 4, 0, 0], sizes = [1, 1, 16, 16], strides = [1, 1, 1, 1]} : vector<2x8x16x16xf32> to vector<1x1x16x16xf32>
    %101 = vector.shape_cast %100 : vector<1x1x16x16xf32> to vector<16x16xf32>
    %102 = vector.broadcast %99 : f32 to vector<16x16xf32>
    %103 = arith.mulf %102, %101 : vector<16x16xf32>
    %104 = arith.addf %98, %103 : vector<16x16xf32>
    %c0_54 = arith.constant 0 : index
    %c5 = arith.constant 5 : index
    %105 = memref.load %arg11[%c0_54, %c5] : memref<1x16xf32, #tpu.memory_space<smem>>
    %106 = vector.extract_strided_slice %38 {offsets = [0, 5, 0, 0], sizes = [1, 1, 16, 16], strides = [1, 1, 1, 1]} : vector<2x8x16x16xf32> to vector<1x1x16x16xf32>
    %107 = vector.shape_cast %106 : vector<1x1x16x16xf32> to vector<16x16xf32>
    %108 = vector.broadcast %105 : f32 to vector<16x16xf32>
    %109 = arith.mulf %108, %107 : vector<16x16xf32>
    %110 = arith.addf %104, %109 : vector<16x16xf32>
    %c0_55 = arith.constant 0 : index
    %c13 = arith.constant 13 : index
    %111 = memref.load %arg11[%c0_55, %c13] : memref<1x16xf32, #tpu.memory_space<smem>>
    %112 = vector.extract_strided_slice %42 {offsets = [0, 5, 0, 0], sizes = [1, 1, 16, 16], strides = [1, 1, 1, 1]} : vector<2x8x16x16xf32> to vector<1x1x16x16xf32>
    %113 = vector.shape_cast %112 : vector<1x1x16x16xf32> to vector<16x16xf32>
    %114 = vector.broadcast %111 : f32 to vector<16x16xf32>
    %115 = arith.mulf %114, %113 : vector<16x16xf32>
    %116 = arith.addf %110, %115 : vector<16x16xf32>
    %c0_56 = arith.constant 0 : index
    %c6 = arith.constant 6 : index
    %117 = memref.load %arg11[%c0_56, %c6] : memref<1x16xf32, #tpu.memory_space<smem>>
    %118 = vector.extract_strided_slice %38 {offsets = [0, 6, 0, 0], sizes = [1, 1, 16, 16], strides = [1, 1, 1, 1]} : vector<2x8x16x16xf32> to vector<1x1x16x16xf32>
    %119 = vector.shape_cast %118 : vector<1x1x16x16xf32> to vector<16x16xf32>
    %120 = vector.broadcast %117 : f32 to vector<16x16xf32>
    %121 = arith.mulf %120, %119 : vector<16x16xf32>
    %122 = arith.addf %116, %121 : vector<16x16xf32>
    %c0_57 = arith.constant 0 : index
    %c14 = arith.constant 14 : index
    %123 = memref.load %arg11[%c0_57, %c14] : memref<1x16xf32, #tpu.memory_space<smem>>
    %124 = vector.extract_strided_slice %42 {offsets = [0, 6, 0, 0], sizes = [1, 1, 16, 16], strides = [1, 1, 1, 1]} : vector<2x8x16x16xf32> to vector<1x1x16x16xf32>
    %125 = vector.shape_cast %124 : vector<1x1x16x16xf32> to vector<16x16xf32>
    %126 = vector.broadcast %123 : f32 to vector<16x16xf32>
    %127 = arith.mulf %126, %125 : vector<16x16xf32>
    %128 = arith.addf %122, %127 : vector<16x16xf32>
    %c0_58 = arith.constant 0 : index
    %c7 = arith.constant 7 : index
    %129 = memref.load %arg11[%c0_58, %c7] : memref<1x16xf32, #tpu.memory_space<smem>>
    %130 = vector.extract_strided_slice %38 {offsets = [0, 7, 0, 0], sizes = [1, 1, 16, 16], strides = [1, 1, 1, 1]} : vector<2x8x16x16xf32> to vector<1x1x16x16xf32>
    %131 = vector.shape_cast %130 : vector<1x1x16x16xf32> to vector<16x16xf32>
    %132 = vector.broadcast %129 : f32 to vector<16x16xf32>
    %133 = arith.mulf %132, %131 : vector<16x16xf32>
    %134 = arith.addf %128, %133 : vector<16x16xf32>
    %c0_59 = arith.constant 0 : index
    %c15 = arith.constant 15 : index
    %135 = memref.load %arg11[%c0_59, %c15] : memref<1x16xf32, #tpu.memory_space<smem>>
    %136 = vector.extract_strided_slice %42 {offsets = [0, 7, 0, 0], sizes = [1, 1, 16, 16], strides = [1, 1, 1, 1]} : vector<2x8x16x16xf32> to vector<1x1x16x16xf32>
    %137 = vector.shape_cast %136 : vector<1x1x16x16xf32> to vector<16x16xf32>
    %138 = vector.broadcast %135 : f32 to vector<16x16xf32>
    %139 = arith.mulf %138, %137 : vector<16x16xf32>
    %140 = arith.addf %134, %139 : vector<16x16xf32>
    %141 = tpu.transpose %140, [1, 0] : vector<16x16xf32> -> vector<16x16xf32>
    %142 = arith.addf %140, %141 : vector<16x16xf32>
    %143 = vector.broadcast %43 : f32 to vector<16x16xf32>
    %144 = arith.addf %142, %143 : vector<16x16xf32>
    %145 = arith.negf %144 : vector<16x16xf32>
    %146 = math.exp %145 : vector<16x16xf32>
    %cst_60 = arith.constant 1.000000e+00 : f32
    %147 = vector.broadcast %cst_60 : f32 to vector<16x16xf32>
    %148 = arith.addf %147, %146 : vector<16x16xf32>
    %149 = arith.divf %147, %148 : vector<16x16xf32>
    %c0_61 = arith.constant 0 : index
    %c0_62 = arith.constant 0 : index
    %c0_63 = arith.constant 0 : index
    %150 = vector.load %arg15[%c0_61, %c0_62, %c0_63] : memref<2x16x16xf32, #tpu.memory_space<vmem>>, vector<1x16x16xf32>
    %151 = vector.shape_cast %150 : vector<1x16x16xf32> to vector<16x16xf32>
    %152 = vector.shape_cast %149 : vector<16x16xf32> to vector<1x16x16xf32>
    tpu.vector_store %arg15[%c0_61, %c0_62, %c0_63], %152 {strides = array<i32>} : memref<2x16x16xf32, #tpu.memory_space<vmem>>, vector<1x16x16xf32>,
    %cst_64 = arith.constant 0.000000e+00 : f32
    %153 = vector.broadcast %cst_64 : f32 to vector<16x16xf32>
    %c0_65 = arith.constant 0 : index
    %c0_66 = arith.constant 0 : index
    %154 = memref.load %arg11[%c0_65, %c0_66] : memref<1x16xf32, #tpu.memory_space<smem>>
    %155 = vector.extract_strided_slice %38 {offsets = [1, 0, 0, 0], sizes = [1, 1, 16, 16], strides = [1, 1, 1, 1]} : vector<2x8x16x16xf32> to vector<1x1x16x16xf32>
    %156 = vector.shape_cast %155 : vector<1x1x16x16xf32> to vector<16x16xf32>
    %157 = vector.broadcast %154 : f32 to vector<16x16xf32>
    %158 = arith.mulf %157, %156 : vector<16x16xf32>
    %159 = arith.addf %153, %158 : vector<16x16xf32>
    %c0_67 = arith.constant 0 : index
    %c8_68 = arith.constant 8 : index
    %160 = memref.load %arg11[%c0_67, %c8_68] : memref<1x16xf32, #tpu.memory_space<smem>>
    %161 = vector.extract_strided_slice %42 {offsets = [1, 0, 0, 0], sizes = [1, 1, 16, 16], strides = [1, 1, 1, 1]} : vector<2x8x16x16xf32> to vector<1x1x16x16xf32>
    %162 = vector.shape_cast %161 : vector<1x1x16x16xf32> to vector<16x16xf32>
    %163 = vector.broadcast %160 : f32 to vector<16x16xf32>
    %164 = arith.mulf %163, %162 : vector<16x16xf32>
    %165 = arith.addf %159, %164 : vector<16x16xf32>
    %c0_69 = arith.constant 0 : index
    %c1_70 = arith.constant 1 : index
    %166 = memref.load %arg11[%c0_69, %c1_70] : memref<1x16xf32, #tpu.memory_space<smem>>
    %167 = vector.extract_strided_slice %38 {offsets = [1, 1, 0, 0], sizes = [1, 1, 16, 16], strides = [1, 1, 1, 1]} : vector<2x8x16x16xf32> to vector<1x1x16x16xf32>
    %168 = vector.shape_cast %167 : vector<1x1x16x16xf32> to vector<16x16xf32>
    %169 = vector.broadcast %166 : f32 to vector<16x16xf32>
    %170 = arith.mulf %169, %168 : vector<16x16xf32>
    %171 = arith.addf %165, %170 : vector<16x16xf32>
    %c0_71 = arith.constant 0 : index
    %c9_72 = arith.constant 9 : index
    %172 = memref.load %arg11[%c0_71, %c9_72] : memref<1x16xf32, #tpu.memory_space<smem>>
    %173 = vector.extract_strided_slice %42 {offsets = [1, 1, 0, 0], sizes = [1, 1, 16, 16], strides = [1, 1, 1, 1]} : vector<2x8x16x16xf32> to vector<1x1x16x16xf32>
    %174 = vector.shape_cast %173 : vector<1x1x16x16xf32> to vector<16x16xf32>
    %175 = vector.broadcast %172 : f32 to vector<16x16xf32>
    %176 = arith.mulf %175, %174 : vector<16x16xf32>
    %177 = arith.addf %171, %176 : vector<16x16xf32>
    %c0_73 = arith.constant 0 : index
    %c2_74 = arith.constant 2 : index
    %178 = memref.load %arg11[%c0_73, %c2_74] : memref<1x16xf32, #tpu.memory_space<smem>>
    %179 = vector.extract_strided_slice %38 {offsets = [1, 2, 0, 0], sizes = [1, 1, 16, 16], strides = [1, 1, 1, 1]} : vector<2x8x16x16xf32> to vector<1x1x16x16xf32>
    %180 = vector.shape_cast %179 : vector<1x1x16x16xf32> to vector<16x16xf32>
    %181 = vector.broadcast %178 : f32 to vector<16x16xf32>
    %182 = arith.mulf %181, %180 : vector<16x16xf32>
    %183 = arith.addf %177, %182 : vector<16x16xf32>
    %c0_75 = arith.constant 0 : index
    %c10_76 = arith.constant 10 : index
    %184 = memref.load %arg11[%c0_75, %c10_76] : memref<1x16xf32, #tpu.memory_space<smem>>
    %185 = vector.extract_strided_slice %42 {offsets = [1, 2, 0, 0], sizes = [1, 1, 16, 16], strides = [1, 1, 1, 1]} : vector<2x8x16x16xf32> to vector<1x1x16x16xf32>
    %186 = vector.shape_cast %185 : vector<1x1x16x16xf32> to vector<16x16xf32>
    %187 = vector.broadcast %184 : f32 to vector<16x16xf32>
    %188 = arith.mulf %187, %186 : vector<16x16xf32>
    %189 = arith.addf %183, %188 : vector<16x16xf32>
    %c0_77 = arith.constant 0 : index
    %c3_78 = arith.constant 3 : index
    %190 = memref.load %arg11[%c0_77, %c3_78] : memref<1x16xf32, #tpu.memory_space<smem>>
    %191 = vector.extract_strided_slice %38 {offsets = [1, 3, 0, 0], sizes = [1, 1, 16, 16], strides = [1, 1, 1, 1]} : vector<2x8x16x16xf32> to vector<1x1x16x16xf32>
    %192 = vector.shape_cast %191 : vector<1x1x16x16xf32> to vector<16x16xf32>
    %193 = vector.broadcast %190 : f32 to vector<16x16xf32>
    %194 = arith.mulf %193, %192 : vector<16x16xf32>
    %195 = arith.addf %189, %194 : vector<16x16xf32>
    %c0_79 = arith.constant 0 : index
    %c11_80 = arith.constant 11 : index
    %196 = memref.load %arg11[%c0_79, %c11_80] : memref<1x16xf32, #tpu.memory_space<smem>>
    %197 = vector.extract_strided_slice %42 {offsets = [1, 3, 0, 0], sizes = [1, 1, 16, 16], strides = [1, 1, 1, 1]} : vector<2x8x16x16xf32> to vector<1x1x16x16xf32>
    %198 = vector.shape_cast %197 : vector<1x1x16x16xf32> to vector<16x16xf32>
    %199 = vector.broadcast %196 : f32 to vector<16x16xf32>
    %200 = arith.mulf %199, %198 : vector<16x16xf32>
    %201 = arith.addf %195, %200 : vector<16x16xf32>
    %c0_81 = arith.constant 0 : index
    %c4_82 = arith.constant 4 : index
    %202 = memref.load %arg11[%c0_81, %c4_82] : memref<1x16xf32, #tpu.memory_space<smem>>
    %203 = vector.extract_strided_slice %38 {offsets = [1, 4, 0, 0], sizes = [1, 1, 16, 16], strides = [1, 1, 1, 1]} : vector<2x8x16x16xf32> to vector<1x1x16x16xf32>
    %204 = vector.shape_cast %203 : vector<1x1x16x16xf32> to vector<16x16xf32>
    %205 = vector.broadcast %202 : f32 to vector<16x16xf32>
    %206 = arith.mulf %205, %204 : vector<16x16xf32>
    %207 = arith.addf %201, %206 : vector<16x16xf32>
    %c0_83 = arith.constant 0 : index
    %c12_84 = arith.constant 12 : index
    %208 = memref.load %arg11[%c0_83, %c12_84] : memref<1x16xf32, #tpu.memory_space<smem>>
    %209 = vector.extract_strided_slice %42 {offsets = [1, 4, 0, 0], sizes = [1, 1, 16, 16], strides = [1, 1, 1, 1]} : vector<2x8x16x16xf32> to vector<1x1x16x16xf32>
    %210 = vector.shape_cast %209 : vector<1x1x16x16xf32> to vector<16x16xf32>
    %211 = vector.broadcast %208 : f32 to vector<16x16xf32>
    %212 = arith.mulf %211, %210 : vector<16x16xf32>
    %213 = arith.addf %207, %212 : vector<16x16xf32>
    %c0_85 = arith.constant 0 : index
    %c5_86 = arith.constant 5 : index
    %214 = memref.load %arg11[%c0_85, %c5_86] : memref<1x16xf32, #tpu.memory_space<smem>>
    %215 = vector.extract_strided_slice %38 {offsets = [1, 5, 0, 0], sizes = [1, 1, 16, 16], strides = [1, 1, 1, 1]} : vector<2x8x16x16xf32> to vector<1x1x16x16xf32>
    %216 = vector.shape_cast %215 : vector<1x1x16x16xf32> to vector<16x16xf32>
    %217 = vector.broadcast %214 : f32 to vector<16x16xf32>
    %218 = arith.mulf %217, %216 : vector<16x16xf32>
    %219 = arith.addf %213, %218 : vector<16x16xf32>
    %c0_87 = arith.constant 0 : index
    %c13_88 = arith.constant 13 : index
    %220 = memref.load %arg11[%c0_87, %c13_88] : memref<1x16xf32, #tpu.memory_space<smem>>
    %221 = vector.extract_strided_slice %42 {offsets = [1, 5, 0, 0], sizes = [1, 1, 16, 16], strides = [1, 1, 1, 1]} : vector<2x8x16x16xf32> to vector<1x1x16x16xf32>
    %222 = vector.shape_cast %221 : vector<1x1x16x16xf32> to vector<16x16xf32>
    %223 = vector.broadcast %220 : f32 to vector<16x16xf32>
    %224 = arith.mulf %223, %222 : vector<16x16xf32>
    %225 = arith.addf %219, %224 : vector<16x16xf32>
    %c0_89 = arith.constant 0 : index
    %c6_90 = arith.constant 6 : index
    %226 = memref.load %arg11[%c0_89, %c6_90] : memref<1x16xf32, #tpu.memory_space<smem>>
    %227 = vector.extract_strided_slice %38 {offsets = [1, 6, 0, 0], sizes = [1, 1, 16, 16], strides = [1, 1, 1, 1]} : vector<2x8x16x16xf32> to vector<1x1x16x16xf32>
    %228 = vector.shape_cast %227 : vector<1x1x16x16xf32> to vector<16x16xf32>
    %229 = vector.broadcast %226 : f32 to vector<16x16xf32>
    %230 = arith.mulf %229, %228 : vector<16x16xf32>
    %231 = arith.addf %225, %230 : vector<16x16xf32>
    %c0_91 = arith.constant 0 : index
    %c14_92 = arith.constant 14 : index
    %232 = memref.load %arg11[%c0_91, %c14_92] : memref<1x16xf32, #tpu.memory_space<smem>>
    %233 = vector.extract_strided_slice %42 {offsets = [1, 6, 0, 0], sizes = [1, 1, 16, 16], strides = [1, 1, 1, 1]} : vector<2x8x16x16xf32> to vector<1x1x16x16xf32>
    %234 = vector.shape_cast %233 : vector<1x1x16x16xf32> to vector<16x16xf32>
    %235 = vector.broadcast %232 : f32 to vector<16x16xf32>
    %236 = arith.mulf %235, %234 : vector<16x16xf32>
    %237 = arith.addf %231, %236 : vector<16x16xf32>
    %c0_93 = arith.constant 0 : index
    %c7_94 = arith.constant 7 : index
    %238 = memref.load %arg11[%c0_93, %c7_94] : memref<1x16xf32, #tpu.memory_space<smem>>
    %239 = vector.extract_strided_slice %38 {offsets = [1, 7, 0, 0], sizes = [1, 1, 16, 16], strides = [1, 1, 1, 1]} : vector<2x8x16x16xf32> to vector<1x1x16x16xf32>
    %240 = vector.shape_cast %239 : vector<1x1x16x16xf32> to vector<16x16xf32>
    %241 = vector.broadcast %238 : f32 to vector<16x16xf32>
    %242 = arith.mulf %241, %240 : vector<16x16xf32>
    %243 = arith.addf %237, %242 : vector<16x16xf32>
    %c0_95 = arith.constant 0 : index
    %c15_96 = arith.constant 15 : index
    %244 = memref.load %arg11[%c0_95, %c15_96] : memref<1x16xf32, #tpu.memory_space<smem>>
    %245 = vector.extract_strided_slice %42 {offsets = [1, 7, 0, 0], sizes = [1, 1, 16, 16], strides = [1, 1, 1, 1]} : vector<2x8x16x16xf32> to vector<1x1x16x16xf32>
    %246 = vector.shape_cast %245 : vector<1x1x16x16xf32> to vector<16x16xf32>
    %247 = vector.broadcast %244 : f32 to vector<16x16xf32>
    %248 = arith.mulf %247, %246 : vector<16x16xf32>
    %249 = arith.addf %243, %248 : vector<16x16xf32>
    %250 = tpu.transpose %249, [1, 0] : vector<16x16xf32> -> vector<16x16xf32>
    %251 = arith.addf %249, %250 : vector<16x16xf32>
    %252 = vector.broadcast %43 : f32 to vector<16x16xf32>
    %253 = arith.addf %251, %252 : vector<16x16xf32>
    %254 = arith.negf %253 : vector<16x16xf32>
    %255 = math.exp %254 : vector<16x16xf32>
    %cst_97 = arith.constant 1.000000e+00 : f32
    %256 = vector.broadcast %cst_97 : f32 to vector<16x16xf32>
    %257 = arith.addf %256, %255 : vector<16x16xf32>
    %258 = arith.divf %256, %257 : vector<16x16xf32>
    %c1_98 = arith.constant 1 : index
    %c0_99 = arith.constant 0 : index
    %c0_100 = arith.constant 0 : index
    %259 = vector.load %arg15[%c1_98, %c0_99, %c0_100] : memref<2x16x16xf32, #tpu.memory_space<vmem>>, vector<1x16x16xf32>
    %260 = vector.shape_cast %259 : vector<1x16x16xf32> to vector<16x16xf32>
    %261 = vector.shape_cast %258 : vector<16x16xf32> to vector<1x16x16xf32>
    tpu.vector_store %arg15[%c1_98, %c0_99, %c0_100], %261 {strides = array<i32>} : memref<2x16x16xf32, #tpu.memory_space<vmem>>, vector<1x16x16xf32>,
    return
  }
}

</mosaic_0001>

<bundles_post_ra>
// kernel: tpu_custom_call.1
= control target key start
LH: loop header
LB: loop body
LE: loop exit
PB: predicated region body
PF: predicated region fallthrough
CT: control target
= control target key end

     0   :  { %22 = vsyncpa [#allocation4], 0  ;;  %s2027_s0 = inlined_call_operand.hbm [shape: f32[32,128], index: 0, kind: input, shape index: {}]   ;;  %s2028_s1 = inlined_call_operand.hbm [shape: f32[32,128], index: 1, kind: input, shape index: {}]   ;;  %s2029_s2 = inlined_call_operand.vmem [shape: f32[16,32], index: 2, kind: input, shape index: {}]   ;;  %s2030_s3 = inlined_call_operand.vmem [shape: f32[16,1], index: 3, kind: input, shape index: {}]   ;;  %s2031_s4 = inlined_call_operand.vmem [shape: f32[3,16], index: 4, kind: input, shape index: {}]   ;;  %s2032_s5 = inlined_call_operand.vmem [shape: f32[3,1], index: 5, kind: input, shape index: {}]   ;;  %s2033_s6 = inlined_call_operand.vmem [shape: f32[2,32], index: 6, kind: input, shape index: {}]   ;;  %s2034_s7 = inlined_call_operand.hbm [shape: f32[2,8,16,16], index: 7, kind: input, shape index: {}]   ;;  %s2035_s8 = inlined_call_operand.hbm [shape: f32[2,8,16,16], index: 8, kind: input, shape index: {}]   ;;  %s2036_s9 = inlined_call_operand.hbm [shape: f32[2,8,16,16], index: 9, kind: input, shape index: {}]   ;;  %s2037_s10 = inlined_call_operand.hbm [shape: f32[2,8,16,16], index: 10, kind: input, shape index: {}]   ;;  %s2038_s11 = inlined_call_operand.vmem [shape: f32[1,16], index: 11, kind: input, shape index: {}]   ;;  %s2039_s12 = inlined_call_operand.<no memory space> [shape: f32[1,1], index: 12, kind: input, shape index: {}]   ;;  %s2040_s13 = inlined_call_operand.hbm [shape: f32[3,128], index: 13, kind: output, shape index: {0}]   ;;  %s2041_s14 = inlined_call_operand.hbm [shape: f32[2,2], index: 14, kind: output, shape index: {1}]   ;;  %s2042_s15 = inlined_call_operand.hbm [shape: f32[2,16,16], index: 15, kind: output, shape index: {2}]  }
   0x1   :  { %23 = vsyncpa [#allocation8], 0 }
   0x2   :  { %24 = vsyncpa [#allocation11], 0 }
   0x3   :  { %25 = vsyncpa [#allocation14], 0 }
   0x4   :  { %26 = vsyncpa [#allocation6], 0 }
   0x5   :  { %27 = vsyncpa [#allocation5], 0 }
   0x6   :  { %28 = vsyncpa [#allocation18], 0  ;;  %s46_s20 = sshll.u32 %s2028_s1, 4  ;;  %s1409_s21 = smov [#allocation7]   ;;  %s47_s20 = int_to_ptr.hbm [resolvable:$true] %s46_s20 }
   0x7   :  { %s48_s22 = sshll.u32 %s1409_s21, 4  ;;  %s82_s25 = sshll.u32 %s2035_s8, 4  ;;  %s49_s22 = int_to_ptr.vmem [resolvable:$true] %s48_s22  ;;  %s83_s25 = int_to_ptr.hbm [resolvable:$true] %s82_s25 }
   0x8   :  { %s1410_s26 = smov 128   ;;  %s1411_s27 = smov 8  }
   0x9   :  { %54 = dma.hbm_to_vmem [thread:$0]  %s47_s20, 512, %s49_s22, [#allocation8], %s1410_s26, %s1410_s26, %s1411_s27  }
   0xa   :  { %s1412_s28 = smov [#allocation10]   ;;  %s33_s1 = sshll.u32 %s2027_s0, 4  ;;  %s34_s1 = int_to_ptr.hbm [resolvable:$true] %s33_s1 }
   0xb   :  { %s84_s29 = sshll.u32 %s1412_s28, 4  ;;  %s69_s18 = sshll.u32 %s2034_s7, 4  ;;  %s85_s29 = int_to_ptr.vmem [resolvable:$true] %s84_s29  ;;  %s70_s18 = int_to_ptr.hbm [resolvable:$true] %s69_s18 }
   0xc   :  { %90 = dma.hbm_to_vmem [thread:$0]  %s83_s25, 4096, %s85_s29, [#allocation11], %s1410_s26, %s1410_s26, %s1411_s27  }
   0xd   :  { %s1413_s19 = smov [#allocation3]   ;;  %s1414_s20 = smov [#allocation9]  }
   0xe   :  { %s35_s21 = sshll.u32 %s1413_s19, 4  ;;  %s71_s0 = sshll.u32 %s1414_s20, 4  ;;  %s36_s21 = int_to_ptr.vmem [resolvable:$true] %s35_s21  ;;  %s72_s0 = int_to_ptr.vmem [resolvable:$true] %s71_s0 }
   0xf   :  { %41 = dma.hbm_to_vmem [thread:$0]  %s34_s1, 512, %s36_s21, [#allocation4], %s1410_s26, %s1410_s26, %s1411_s27  }
  0x10   :  { %s95_s24 = sshll.u32 %s2036_s9, 4  ;;  %s108_s28 = sshll.u32 %s2037_s10, 4  ;;  %s96_s24 = int_to_ptr.hbm [resolvable:$true] %s95_s24  ;;  %s109_s28 = int_to_ptr.hbm [resolvable:$true] %s108_s28 }
  0x11   :  { %77 = dma.hbm_to_vmem [thread:$0]  %s70_s18, 4096, %s72_s0, [#allocation8], %s1410_s26, %s1410_s26, %s1411_s27  }
  0x12   :  { %s1415_s29 = smov [#allocation12]   ;;  %s1416_s16 = smov [#allocation13]  }
  0x13   :  { %s97_s30 = sshll.u32 %s1415_s29, 4  ;;  %s110_s9 = sshll.u32 %s1416_s16, 4  ;;  %s98_s30 = int_to_ptr.vmem [resolvable:$true] %s97_s30  ;;  %s111_s9 = int_to_ptr.vmem [resolvable:$true] %s110_s9 }
  0x14   :  { %103 = dma.hbm_to_vmem [thread:$0]  %s96_s24, 4096, %s98_s30, [#allocation11], %s1410_s26, %s1410_s26, %s1411_s27  }
  0x15   :  { %s122_s17 = sshll.u32 %s2038_s11, 4  ;;  %s1417_s10 = smov [#allocation15]   ;;  %s123_s17 = int_to_ptr.vmem [resolvable:$true] %s122_s17 }
  0x16   :  { %116 = dma.hbm_to_vmem [thread:$0]  %s109_s28, 4096, %s111_s9, [#allocation14], %s1410_s26, %s1410_s26, %s1411_s27  }
  0x17   :  { %125 = dma.vmem_to_smem %s123_s17, 16, %s1417_s10, [#allocation6]  }
  0x18   :  { %1395 = dma.done.wait [#allocation4], 512  }
  0x19   :  { %1396 = vsyncadd [#allocation4], 4294966784 }
  0x1a   :  { %1397 = dma.done.wait [#allocation8], 4608  }
  0x1b   :  { %1398 = vsyncadd [#allocation8], 4294962688 }
  0x1c   :  { %1399 = dma.done.wait [#allocation11], 8192  }
  0x1d   :  { %1400 = vsyncadd [#allocation11], 4294959104 }
  0x1e   :  { %1401 = dma.done.wait [#allocation14], 4096  }
  0x1f   :  { %1402 = vsyncadd [#allocation14], 4294963200 }
  0x20   :  { %1403 = dma.done.wait [#allocation6], 16  }
  0x21   :  { %1404 = vsyncadd [#allocation6], 4294967280 }
  0x22   :  { %156 = sfence }
  0x23   :  { %v160_v0 = vld [vmem:[#allocation3 + $0x18] sm:$0xff]  ;;  %v159_v2 = vld [vmem:[#allocation3 + $0x10] sm:$0xff]  ;;  %v1418_v5 = vmov 0   ;;  %v176_v6 = vld [vmem:[%s2030_s3 + $0x8] sm:$0xff]  ;;  %vm2043_vm0 = vcmask 261120   ;;  %v251_v22 = vlaneseq  ;;  %v1419_v31 = vmov 0.015625  }
  0x24   :  { %v164_v1 = vld [vmem:[#allocation7 + $0x18] sm:$0xff]  ;;  %v163_v4 = vld [vmem:[#allocation7 + $0x10] sm:$0xff]  ;;  %1150 = vset.pattern.permute.xlu0 %v1418_v5  ;;  %v158_v7 = vld [vmem:[#allocation3 + $0x8] sm:$0xff]  ;;  %v2067_v53 = vmov 0  ;;  %v2069_v55 = vmov 0  ;;  %v2071_v60 = vmov 0 }
  0x25   :  { %v168_v3 = vsub.f32 %v160_v0, %v164_v1  ;;  %v167_v8 = vsub.f32 %v159_v2, %v163_v4  ;;  %184 = vperm.xlu0 %1150, %v176_v6   ;;  %v162_v9 = vld [vmem:[#allocation7 + $0x8] sm:$0xff]  ;;  %v157_v10 = vld [vmem:[#allocation3] sm:$0xff]  ;;  %v269_v23 = vand.u32 127, %v251_v22  ;;  %v1571_v24 = vshrl.u32 %v251_v22, 7  ;;  %s1070_s25 = sld [smem:[#allocation15 + $0x1]]  ;;  %v526_v35 = vld [vmem:[#allocation10 + $0x30] sm:$0xff] }
  0x26   :  { %v161_v11 = vld [vmem:[#allocation7] sm:$0xff]  ;;  %v166_v13 = vsub.f32 %v158_v7, %v162_v9  ;;  %v174_v21 = vld [vmem:[%s2029_s2 + $0x8] sm:$0xff]  ;;  %v394_v7 = vld [vmem:[#allocation9 + $0x10] sm:$0xff]  ;;  %s1801_s28 = sld [smem:[#allocation15 + $0x9]]  ;;  %s1002_s24 = sshll.u32 %s2040_s13, 4  ;;  %s1003_s24 = int_to_ptr.hbm [resolvable:$true] %s1002_s24 }
  0x27   :  { %v1545_v12 = vand.u32 2147483647, %v168_v3  ;;  %v165_v14 = vsub.f32 %v157_v10, %v161_v11  ;;  %v1547_v15 = vand.u32 2147483647, %v167_v8  ;;  %v175_v18 = vld [vmem:[%s2030_s3] sm:$0xff]  ;;  %v287_v25 = vadd.s32 1, %v269_v23 }
  0x28   :  { %v1550_v16 = vand.u32 2147483647, %v166_v13  ;;  %v173_v19 = vld [vmem:[%s2029_s2] sm:$0xff]  ;;  %v267_v26 = vadd.s32 120, %v1571_v24  ;;  %v1574_v27 = vmul.u32 64, %v269_v23  ;;  %v266_v30 = vadd.s32 112, %v1571_v24 }
  0x29   :  { %206 = vmatpush.msra.mxu0 %v1545_v12  ;;  %v1553_v17 = vand.u32 2147483647, %v165_v14  ;;  %v220_v20 = vld [vmem:[%s2032_s5] sm:$0x7]  ;;  %v1576_v28 = vmul.u32 64, %v287_v25  ;;  %v265_v32 = vadd.s32 104, %v1571_v24 }
  0x2a   :  { %vm286_vm1 = vcmp.ge.s32.totalorder %v267_v26, %v1574_v27  ;;  %vm285_vm4 = vcmp.ge.s32.totalorder %v266_v30, %v1574_v27  ;;  %v264_v34 = vadd.s32 96, %v1571_v24  ;;  %v263_v36 = vadd.s32 88, %v1571_v24  ;;  %v219_v3 = vld [vmem:[%s2031_s4] sm:$0x7]  ;;  %s649_s4 = sld [smem:[#allocation15]]  ;;  %v426_v8 = vld [vmem:[#allocation12 + $0x10] sm:$0xff] }
  0x2b   :  { %207 = vmatpush.msra.mxu0 %v1547_v15  ;;  %vm304_vm2 = vcmp.lt.s32.totalorder %v267_v26, %v1576_v28  ;;  %vm303_vm5 = vcmp.lt.s32.totalorder %v266_v30, %v1576_v28  ;;  %vm284_vm7 = vcmp.ge.s32.totalorder %v265_v32, %v1574_v27  ;;  %vm302_vm8 = vcmp.lt.s32.totalorder %v265_v32, %v1576_v28  ;;  %v392_v5 = vld [vmem:[#allocation9] sm:$0xff]  ;;  %s1069_s5 = sld [smem:[#allocation15 + $0x8]]  ;;  %v406_v46 = vld [vmem:[#allocation9 + $0x70] sm:$0xff]  ;;  %s1420_s7 = smov [#allocation16]  }
  0x2c   :  { %vm1580_vm3 = vmand %vm286_vm1, %vm304_vm2  ;;  %vm283_vm10 = vcmp.ge.s32.totalorder %v264_v34, %v1574_v27  ;;  %vm301_vm11 = vcmp.lt.s32.totalorder %v264_v34, %v1576_v28  ;;  %vm282_vm13 = vcmp.ge.s32.totalorder %v263_v36, %v1574_v27  ;;  %vm300_vm14 = vcmp.lt.s32.totalorder %v263_v36, %v1576_v28  ;;  %v424_v6 = vld [vmem:[#allocation12] sm:$0xff]  ;;  %s1806_s29 = sld [smem:[#allocation15 + $0x2]]  ;;  %v558_v36 = vld [vmem:[#allocation13 + $0x30] sm:$0xff]  ;;  %s1000_s2 = sshll.u32 %s1420_s7, 4  ;;  %s1001_s2 = int_to_ptr.vmem [resolvable:$true] %s1000_s2 }
  0x2d   :  { %208 = vmatpush.msra.mxu0 %v1550_v16  ;;  %179 = vperm.xlu0 %1150, %v175_v18   ;;  %vm1594_vm6 = vmand %vm285_vm4, %vm303_vm5  ;;  %v262_v38 = vadd.s32 80, %v1571_v24  ;;  %v261_v40 = vadd.s32 72, %v1571_v24  ;;  %v260_v42 = vadd.s32 64, %v1571_v24  ;;  %v259_v45 = vadd.s32 56, %v1571_v24  ;;  %v396_v10 = vld [vmem:[#allocation9 + $0x20] sm:$0xff]  ;;  %s1814_s30 = sld [smem:[#allocation15 + $0xa]] }
  0x2e   :  { %1052 = vmatpush.msk.msra.mxu1 %vm1580_vm3, %v1419_v31  ;;  %1103 = vmatpush.msk.msra.mxu2 %vm1580_vm3, %v1419_v31  ;;  %vm1607_vm9 = vmand %vm284_vm7, %vm302_vm8  ;;  %v258_v47 = vadd.s32 48, %v1571_v24  ;;  %v257_v50 = vadd.s32 40, %v1571_v24  ;;  %v256_v52 = vadd.s32 32, %v1571_v24  ;;  %v255_v54 = vadd.s32 24, %v1571_v24  ;;  %v428_v13 = vld [vmem:[#allocation12 + $0x20] sm:$0xff]  ;;  %s1823_s16 = sld [smem:[#allocation15 + $0x3]] }
  0x2f   :  { %209 = vmatpush.msra.mxu0 %v1553_v17  ;;  %vm1620_vm12 = vmand %vm283_vm10, %vm301_vm11  ;;  %vm281_vm1 = vcmp.ge.s32.totalorder %v262_v38, %v1574_v27  ;;  %vm299_vm2 = vcmp.lt.s32.totalorder %v262_v38, %v1576_v28  ;;  %vm280_vm5 = vcmp.ge.s32.totalorder %v261_v40, %v1574_v27  ;;  %vm298_vm7 = vcmp.lt.s32.totalorder %v261_v40, %v1576_v28  ;;  %v520_v14 = vld [vmem:[#allocation10] sm:$0xff]  ;;  %s1829_s9 = sld [smem:[#allocation15 + $0xb]] }
  0x30   :  { %1049 = vmatmul.msk.f32.vlgmr.msra.gmra.mxu0 %vm2043_vm0, %v173_v19  ;;  %1053 = vmatpush.msk.msra.mxu1 %vm1594_vm6, %v1419_v31  ;;  %vm1633_vm15 = vmand %vm282_vm13, %vm300_vm14  ;;  %vm279_vm10 = vcmp.ge.s32.totalorder %v260_v42, %v1574_v27  ;;  %vm297_vm11 = vcmp.lt.s32.totalorder %v260_v42, %v1576_v28  ;;  %vm278_vm14 = vcmp.ge.s32.totalorder %v259_v45, %v1574_v27  ;;  %v254_v57 = vadd.s32 16, %v1571_v24  ;;  %v524_v18 = vld [vmem:[#allocation10 + $0x20] sm:$0xff]  ;;  %s1834_s1 = sld [smem:[#allocation15 + $0x4]] }
  0x31   :  { %1105 = vmatpush.msk.msra.mxu2 %vm1594_vm6, %v1419_v31  ;;  %vm1646_vm4 = vmand %vm281_vm1, %vm299_vm2  ;;  %vm296_vm1 = vcmp.lt.s32.totalorder %v259_v45, %v1576_v28  ;;  %v253_v62 = vadd.s32 8, %v1571_v24  ;;  %v456_v9 = vsub.f32 %v392_v5, %v424_v6  ;;  %v458_v11 = vsub.f32 %v394_v7, %v426_v8  ;;  %v552_v19 = vld [vmem:[#allocation13] sm:$0xff]  ;;  %s1841_s8 = sld [smem:[#allocation15 + $0xc]]  ;;  %v393_v6 = vld [vmem:[#allocation9 + $0x8] sm:$0xff] }
  0x32   :  { %1054 = vmatpush.msk.msra.mxu1 %vm1607_vm9, %v1419_v31  ;;  %vm1659_vm8 = vmand %vm280_vm5, %vm298_vm7  ;;  %vm277_vm5 = vcmp.ge.s32.totalorder %v258_v47, %v1574_v27  ;;  %vm295_vm7 = vcmp.lt.s32.totalorder %v258_v47, %v1576_v28  ;;  %v1812_v22 = vstv %s649_s4  ;;  %v460_v23 = vsub.f32 %v396_v10, %v428_v13  ;;  %v400_v38 = vld [vmem:[#allocation9 + $0x40] sm:$0xff]  ;;  %v434_v47 = vld [vmem:[#allocation12 + $0x50] sm:$0xff]  ;;  %s1846_s17 = sld [smem:[#allocation15 + $0x5]] }
  0x33   :  { %1107 = vmatpush.msk.msra.mxu2 %vm1607_vm9, %v1419_v31  ;;  %vm1672_vm13 = vmand %vm279_vm10, %vm297_vm11  ;;  %vm276_vm11 = vcmp.ge.s32.totalorder %v257_v50, %v1574_v27  ;;  %v584_v25 = vsub.f32 %v520_v14, %v552_v19  ;;  %v1821_v29 = vstv %s1070_s25  ;;  %v1832_v37 = vstv %s1801_s28  ;;  %v432_v39 = vld [vmem:[#allocation12 + $0x40] sm:$0xff]  ;;  %s1855_s10 = sld [smem:[#allocation15 + $0xd]]  ;;  %v425_v7 = vld [vmem:[#allocation12 + $0x8] sm:$0xff]  ;;  %s1013_s25 = sshll.u32 %s2041_s14, 4  ;;  %s1014_s25 = int_to_ptr.hbm [resolvable:$true] %s1013_s25 }
  0x34   :  { %1055 = vmatpush.msk.msra.mxu1 %vm1620_vm12, %v1419_v31  ;;  %vm1685_vm2 = vmand %vm278_vm14, %vm296_vm1  ;;  %vm294_vm14 = vcmp.lt.s32.totalorder %v257_v50, %v1576_v28  ;;  %v492_v41 = vand.u32 2147483647, %v460_v23  ;;  %v404_v45 = vld [vmem:[#allocation9 + $0x60] sm:$0xff]  ;;  %s1861_s11 = sld [smem:[#allocation15 + $0x6]]  ;;  %v1864_v10 = vstv %s1823_s16  ;;  %v530_v19 = vld [vmem:[#allocation10 + $0x50] sm:$0xff]  ;;  %v457_v23 = vsub.f32 %v393_v6, %v425_v7  ;;  %s1422_s28 = smov [#allocation19]  }
  0x35   :  { %223 = vperm.xlu0 %1150, %v220_v20   ;;  %1109 = vmatpush.msk.msra.mxu2 %vm1620_vm12, %v1419_v31  ;;  %vm1698_vm10 = vmand %vm277_vm5, %vm295_vm7  ;;  %vm275_vm5 = vcmp.ge.s32.totalorder %v256_v52, %v1574_v27  ;;  %vm293_vm7 = vcmp.lt.s32.totalorder %v256_v52, %v1576_v28  ;;  %v554_v20 = vld [vmem:[#allocation13 + $0x10] sm:$0xff]  ;;  %v616_v32 = vand.u32 2147483647, %v584_v25  ;;  %v436_v50 = vld [vmem:[#allocation12 + $0x60] sm:$0xff]  ;;  %s1866_s18 = sld [smem:[#allocation15 + $0x7]] }
  0x36   :  { %1056 = vmatpush.msk.msra.mxu1 %vm1633_vm15, %v1419_v31  ;;  %vm1711_vm1 = vmand %vm276_vm11, %vm294_vm14  ;;  %vm274_vm11 = vcmp.ge.s32.totalorder %v255_v54, %v1574_v27  ;;  %vm292_vm14 = vcmp.lt.s32.totalorder %v255_v54, %v1576_v28  ;;  %v438_v52 = vld [vmem:[#allocation12 + $0x70] sm:$0xff]  ;;  %v590_v54 = vsub.f32 %v526_v35, %v558_v36  ;;  %v468_v8 = vsub.f32 %v404_v45, %v436_v50  ;;  %s1882_s19 = sld [smem:[#allocation15 + $0xe]] }
  0x37   :  { %1111 = vmatpush.msk.msra.mxu2 %vm1633_vm15, %v1419_v31  ;;  %v2068_v53 = vsel %vm1711_vm1, 4294967295, %v2067_v53  ;;  %s1914_s21 = sld [smem:[#allocation15 + $0xf]] }
  0x38   :  { %1050 = vmatmul.msk.f32.gmra.mxu0 %vm2043_vm0, %v174_v21  ;;  %1057 = vmatpush.msk.msra.mxu1 %vm1646_vm4, %v1419_v31  ;;  %vm1724_vm0 = vmand %vm275_vm5, %vm293_vm7  ;;  %vm273_vm7 = vcmp.ge.s32.totalorder %v254_v57, %v1574_v27  ;;  %v556_v21 = vld [vmem:[#allocation13 + $0x20] sm:$0xff] }
  0x39   :  { %1113 = vmatpush.msk.msra.mxu2 %vm1646_vm4, %v1419_v31  ;;  %v2070_v55 = vsel %vm1724_vm0, 4294967295, %v2069_v55  ;;  %vm1737_vm5 = vmand %vm274_vm11, %vm292_vm14  ;;  %vm272_vm11 = vcmp.ge.s32.totalorder %v253_v62, %v1574_v27  ;;  %vm290_vm14 = vcmp.lt.s32.totalorder %v253_v62, %v1576_v28  ;;  %v588_v30 = vsub.f32 %v524_v18, %v556_v21  ;;  %v560_v62 = vld [vmem:[#allocation13 + $0x40] sm:$0xff] }
  0x3a   :  { %1058 = vmatpush.msk.msra.mxu1 %vm1659_vm8, %v1419_v31  ;;  %v2072_v60 = vsel %vm1737_vm5, 4294967295, %v2071_v60  ;;  %v1873_v21 = vstv %s1829_s9  ;;  %v1898_v45 = vstv %s1855_s10  ;;  %s1023_s9 = sshll.u32 %s2042_s15, 4  ;;  %s1024_s9 = int_to_ptr.hbm [resolvable:$true] %s1023_s9 }
  0x3b   :  { %1115 = vmatpush.msk.msra.mxu2 %vm1659_vm8, %v1419_v31 }
  0x3c   :  { %1059 = vmatpush.msk.msra.mxu1 %vm1672_vm13, %v1419_v31 }
  0x3d   :  { %1117 = vmatpush.msk.msra.mxu2 %vm1672_vm13, %v1419_v31 }
  0x3e   :  { %1060 = vmatpush.msk.msra.mxu1 %vm1685_vm2, %v1419_v31 }
  0x3f   :  { %1119 = vmatpush.msk.msra.mxu2 %vm1685_vm2, %v1419_v31 }
  0x40   :  { %1061 = vmatpush.msk.msra.mxu1 %vm1698_vm10, %v1419_v31 }
  0x41   :  { %1121 = vmatpush.msk.msra.mxu2 %vm1698_vm10, %v1419_v31 }
  0x42   :  { %1062 = vmatpush.msk.msra.mxu1 %vm1711_vm1, %v1419_v31 }
  0x43   :  { %1123 = vmatpush.msk.msra.mxu2 %vm1711_vm1, %v1419_v31 }
  0x44   :  { %1063 = vmatpush.msk.msra.mxu1 %vm1724_vm0, %v1419_v31 }
  0x45   :  { %1125 = vmatpush.msk.msra.mxu2 %vm1724_vm0, %v1419_v31  ;;  %vm291_vm0 = vcmp.lt.s32.totalorder %v254_v57, %v1576_v28 }
  0x46   :  { %1064 = vmatpush.msk.msra.mxu1 %vm1737_vm5, %v1419_v31  ;;  %vm1750_vm1 = vmand %vm273_vm7, %vm291_vm0  ;;  %vm226_vm0 = vcmask 130048   ;;  %vm271_vm7 = vcmp.ge.s32.totalorder %v1571_v24, %v1574_v27  ;;  %v398_v27 = vld [vmem:[#allocation9 + $0x30] sm:$0xff] }
  0x47   :  { %1127 = vmatpush.msk.msra.mxu2 %vm1737_vm5, %v1419_v31  ;;  %vm1762_vm5 = vmand %vm272_vm11, %vm290_vm14  ;;  %vm289_vm11 = vcmp.lt.s32.totalorder %v1571_v24, %v1576_v28  ;;  %v490_v24 = vand.u32 2147483647, %v458_v11  ;;  %v1819_v28 = vstv %s1069_s5  ;;  %v622_v11 = vand.u32 2147483647, %v590_v54  ;;  %v525_v54 = vld [vmem:[#allocation10 + $0x28] sm:$0xff] }
  0x48   :  { %1065 = vmatpush.msk.msra.mxu1 %vm1750_vm1, %v1419_v31  ;;  %vm1779_vm14 = vmand %vm271_vm7, %vm289_vm11  ;;  %v657_v42 = vmul.f32 %v1819_v28, %v616_v32 }
  0x49   :  { %1129 = vmatpush.msk.msra.mxu2 %vm1750_vm1, %v1419_v31  ;;  %v663_v43 = vmul.f32 %v1821_v29, %v490_v24 }
  0x4a   :  { %1066 = vmatpush.msk.msra.mxu1 %vm1762_vm5, %v1419_v31 }
  0x4b   :  { %1131 = vmatpush.msk.msra.mxu2 %vm1762_vm5, %v1419_v31 }
  0x4c   :  { %1067 = vmatpush.msk.msra.mxu1 %vm1779_vm14, %v1419_v31 }
  0x4d   :  { %1133 = vmatpush.msk.msra.mxu2 %vm1779_vm14, %v1419_v31  ;;  %353 = vmatmul.f32.vlgmr.msra.gmra.mxu1 %v1553_v17  ;;  %v488_v17 = vand.u32 2147483647, %v456_v9  ;;  %v470_v9 = vsub.f32 %v406_v46, %v438_v52  ;;  %v555_v46 = vld [vmem:[#allocation13 + $0x18] sm:$0xff] }
  0x4e   :  { %359 = vmatmul.f32.vlgmr.msra.gmra.mxu2 %v1547_v15  ;;  %v522_v15 = vld [vmem:[#allocation10 + $0x10] sm:$0xff] }
  0x4f   :  { %v586_v26 = vsub.f32 %v522_v15, %v554_v20  ;;  %v651_v34 = vmul.f32 %v1812_v22, %v488_v17  ;;  %v395_v15 = vld [vmem:[#allocation9 + $0x18] sm:$0xff]  ;;  %v562_v20 = vld [vmem:[#allocation13 + $0x50] sm:$0xff] }
  0x50   :  { %v427_v17 = vld [vmem:[#allocation12 + $0x18] sm:$0xff]  ;;  %v594_v35 = vsub.f32 %v530_v19, %v562_v20  ;;  %v401_v19 = vld [vmem:[#allocation9 + $0x48] sm:$0xff] }
  0x51   :  { %v618_v33 = vand.u32 2147483647, %v586_v26  ;;  %v659_v57 = vadd.f32 %v657_v42, %v651_v34  ;;  %v1880_v26 = vstv %s1834_s1  ;;  %v459_v32 = vsub.f32 %v395_v15, %v427_v17  ;;  %v523_v34 = vld [vmem:[#allocation10 + $0x18] sm:$0xff]  ;;  %v564_v42 = vld [vmem:[#allocation13 + $0x60] sm:$0xff] }
  0x52   :  { %v527_v20 = vld [vmem:[#allocation10 + $0x38] sm:$0xff] }
  0x55   :  { %356 = vmatmul.f32.gmra.mxu1 %v1550_v16  ;;  %v430_v16 = vld [vmem:[#allocation12 + $0x30] sm:$0xff] }
  0x56   :  { %v462_v40 = vsub.f32 %v398_v27, %v430_v16  ;;  %v500_v27 = vand.u32 2147483647, %v468_v8  ;;  %v1884_v16 = vand.u32 2147483647, %v470_v9  ;;  %v399_v8 = vld [vmem:[#allocation9 + $0x38] sm:$0xff] }
  0x57   :  { %v431_v9 = vld [vmem:[#allocation12 + $0x38] sm:$0xff] }
  0x97   :  { %v185_v44 = vpop.permute.xlu0 %184 }
  0x9f   :  { %v180_v56 = vpop.permute.xlu0 %179 }
  0xad   :  { %v211_v48 = vpop.f32.mrf.mxu0 }
  0xae   :  { %v212_v58 = vadd.f32 %v211_v48, %v180_v56  ;;  %v1844_v48 = vstv %s1806_s29  ;;  %v620_v56 = vand.u32 2147483647, %v588_v30  ;;  %v1887_v30 = vstv %s1846_s17  ;;  %s1021_s29 = sshll.u32 %s1422_s28, 4  ;;  %s1022_s29 = int_to_ptr.vmem [resolvable:$true] %s1021_s29 }
  0xaf   :  { %v675_v5 = vmul.f32 %v1844_v48, %v492_v41  ;;  %v429_v41 = vld [vmem:[#allocation12 + $0x28] sm:$0xff] }
  0xb0   :  { %v217_v2 = vmax.f32 %v212_v58, 0.0  ;;  %v669_v58 = vmul.f32 %v1832_v37, %v618_v33  ;;  %v521_v33 = vld [vmem:[#allocation10 + $0x8] sm:$0xff] }
  0xb5   :  { %v214_v59 = vpop.f32.mrf.mxu0 }
  0xb6   :  { %v215_v61 = vadd.f32 %v214_v59, %v185_v44  ;;  %v402_v44 = vld [vmem:[#allocation9 + $0x50] sm:$0xff]  ;;  %v464_v59 = vsub.f32 %v400_v38, %v432_v39  ;;  %v693_v39 = vmul.f32 %v1873_v21, %v622_v11 }
  0xb7   :  { %v466_v49 = vsub.f32 %v402_v44, %v434_v47  ;;  %v1895_v44 = vstv %s1841_s8  ;;  %v489_v47 = vand.u32 2147483647, %v457_v23  ;;  %v559_v23 = vld [vmem:[#allocation13 + $0x38] sm:$0xff] }
  0xb8   :  { %v218_v0 = vmax.f32 %v215_v61, 0.0  ;;  %v528_v61 = vld [vmem:[#allocation10 + $0x40] sm:$0xff]  ;;  %v496_v18 = vand.u32 2147483647, %v464_v59  ;;  %v534_v59 = vld [vmem:[#allocation10 + $0x70] sm:$0xff] }
  0xb9   :  { %v592_v51 = vsub.f32 %v528_v61, %v560_v62  ;;  %v566_v61 = vld [vmem:[#allocation13 + $0x70] sm:$0xff]  ;;  %v1905_v62 = vstv %s1861_s11 }
  0xba   :  { %244 = vmatpush.msra.mxu3 %v218_v0  ;;  %v1853_v0 = vstv %s1814_s30  ;;  %v598_v1 = vsub.f32 %v534_v59, %v566_v61  ;;  %v723_v17 = vmul.f32 %v1905_v62, %v500_v27  ;;  %v410_v59 = vld [vmem:[#allocation9 + $0x90] sm:$0xff] }
  0xbb   :  { %v681_v14 = vmul.f32 %v1853_v0, %v620_v56  ;;  %v624_v36 = vand.u32 2147483647, %v592_v51  ;;  %v557_v56 = vld [vmem:[#allocation13 + $0x28] sm:$0xff]  ;;  %v442_v61 = vld [vmem:[#allocation12 + $0x90] sm:$0xff] }
  0xbc   :  { %245 = vmatpush.msra.mxu3 %v217_v2  ;;  %v494_v2 = vand.u32 2147483647, %v462_v40  ;;  %v397_v40 = vld [vmem:[#allocation9 + $0x28] sm:$0xff]  ;;  %v589_v51 = vsub.f32 %v525_v54, %v557_v56 }
  0xbd   :  { %1051 = vmatmul.msk.f32.vlgmr.msra.gmra.mxu3 %vm226_vm0, %v219_v3  ;;  %v665_v3 = vadd.f32 %v663_v43, %v659_v57  ;;  %v699_v43 = vmul.f32 %v1880_v26, %v496_v18  ;;  %v705_v7 = vmul.f32 %v1895_v44, %v624_v36  ;;  %v1922_v18 = vstv %s1882_s19  ;;  %v408_v36 = vld [vmem:[#allocation9 + $0x80] sm:$0xff] }
  0xbe   :  { %1104 = vmatpush.msk.msrb.mxu3 %vm1580_vm3, %v1419_v31  ;;  %vm2079_vm3 = vnez %v2068_v53  ;;  %v498_v53 = vand.u32 2147483647, %v466_v49  ;;  %v687_v25 = vmul.f32 %v1864_v10, %v494_v2  ;;  %v1908_v49 = vstv %s1866_s18 }
  0xbf   :  { %v671_v13 = vadd.f32 %v669_v58, %v665_v3  ;;  %v587_v58 = vsub.f32 %v523_v34, %v555_v46  ;;  %v461_v2 = vsub.f32 %v397_v40, %v429_v41  ;;  %v491_v3 = vand.u32 2147483647, %v459_v32  ;;  %v405_v46 = vld [vmem:[#allocation9 + $0x68] sm:$0xff] }
  0xc0   :  { %1106 = vmatpush.msk.msrb.mxu3 %vm1594_vm6, %v1419_v31  ;;  %vm2080_vm6 = vnez %v2070_v55  ;;  %v532_v55 = vld [vmem:[#allocation10 + $0x60] sm:$0xff]  ;;  %v711_v52 = vmul.f32 %v1887_v30, %v498_v53  ;;  %v403_v53 = vld [vmem:[#allocation9 + $0x58] sm:$0xff]  ;;  %v463_v32 = vsub.f32 %v399_v8, %v431_v9  ;;  %v621_v40 = vand.u32 2147483647, %v589_v51 }
  0xc1   :  { %v677_v24 = vadd.f32 %v675_v5, %v671_v13  ;;  %v596_v63 = vsub.f32 %v532_v55, %v564_v42  ;;  %v626_v5 = vand.u32 2147483647, %v594_v35  ;;  %v619_v13 = vand.u32 2147483647, %v587_v58  ;;  %v531_v9 = vld [vmem:[#allocation10 + $0x58] sm:$0xff] }
  0xc2   :  { %1108 = vmatpush.msk.msrb.mxu3 %vm1607_vm9, %v1419_v31  ;;  %vm2081_vm9 = vnez %v2072_v60  ;;  %v553_v60 = vld [vmem:[#allocation13 + $0x8] sm:$0xff]  ;;  %v735_v35 = vmul.f32 %v1908_v49, %v1884_v16  ;;  %v563_v51 = vld [vmem:[#allocation13 + $0x58] sm:$0xff] }
  0xc3   :  { %v683_v38 = vadd.f32 %v681_v14, %v677_v24  ;;  %v585_v57 = vsub.f32 %v521_v33, %v553_v60  ;;  %v652_v14 = vmul.f32 %v1812_v22, %v489_v47  ;;  %v433_v24 = vld [vmem:[#allocation12 + $0x48] sm:$0xff]  ;;  %v493_v33 = vand.u32 2147483647, %v461_v2 }
  0xc4   :  { %1110 = vmatpush.msk.msrb.mxu3 %vm1620_vm12, %v1419_v31  ;;  %v628_v4 = vand.u32 2147483647, %v596_v63  ;;  %v717_v27 = vmul.f32 %v1898_v45, %v626_v5  ;;  %v670_v42 = vmul.f32 %v1832_v37, %v619_v13  ;;  %v630_v47 = vand.u32 2147483647, %v598_v1 }
  0xc5   :  { %v689_v50 = vadd.f32 %v687_v25, %v683_v38  ;;  %v617_v11 = vand.u32 2147483647, %v585_v57  ;;  %v435_v25 = vld [vmem:[#allocation12 + $0x58] sm:$0xff]  ;;  %v529_v38 = vld [vmem:[#allocation10 + $0x48] sm:$0xff]  ;;  %v465_v54 = vsub.f32 %v401_v19, %v433_v24  ;;  %v495_v57 = vand.u32 2147483647, %v463_v32 }
  0xc6   :  { %1112 = vmatpush.msk.msrb.mxu3 %vm1633_vm15, %v1419_v31  ;;  %v467_v56 = vsub.f32 %v403_v53, %v435_v25  ;;  %v676_v16 = vmul.f32 %v1844_v48, %v493_v33  ;;  %v729_v63 = vmul.f32 %v1922_v18, %v628_v4  ;;  %v1934_v5 = vstv %s1914_s21  ;;  %v538_v53 = vld [vmem:[#allocation10 + $0x90] sm:$0xff]  ;;  %v533_v25 = vld [vmem:[#allocation10 + $0x68] sm:$0xff] }
  0xc7   :  { %v695_v6 = vadd.f32 %v693_v39, %v689_v50  ;;  %v658_v34 = vmul.f32 %v1819_v28, %v617_v11  ;;  %v561_v39 = vld [vmem:[#allocation13 + $0x48] sm:$0xff]  ;;  %v741_v24 = vmul.f32 %v1934_v5, %v630_v47  ;;  %v688_v33 = vmul.f32 %v1864_v10, %v495_v57 }
  0xc8   :  { %1114 = vmatpush.msk.msrb.mxu3 %vm1646_vm4, %v1419_v31  ;;  %v437_v50 = vld [vmem:[#allocation12 + $0x68] sm:$0xff]  ;;  %v499_v19 = vand.u32 2147483647, %v467_v56  ;;  %v567_v56 = vld [vmem:[#allocation13 + $0x78] sm:$0xff]  ;;  %vm2082_vm12 = vcmask 261120  }
  0xc9   :  { %v701_v15 = vadd.f32 %v699_v43, %v695_v6  ;;  %v660_v41 = vadd.f32 %v658_v34, %v652_v14  ;;  %v440_v43 = vld [vmem:[#allocation12 + $0x80] sm:$0xff]  ;;  %v1936_v6 = vld [vmem:[#allocation9 + $0x78] sm:$0xff]  ;;  %v469_v8 = vsub.f32 %v405_v46, %v437_v50  ;;  %v682_v14 = vmul.f32 %v1853_v0, %v621_v40 }
  0xca   :  { %1116 = vmatpush.msk.msrb.mxu3 %vm1659_vm8, %v1419_v31  ;;  %v472_v2 = vsub.f32 %v408_v36, %v440_v43  ;;  %v412_v34 = vld [vmem:[#allocation9 + $0xa0] sm:$0xff]  ;;  %v565_v36 = vld [vmem:[#allocation13 + $0x68] sm:$0xff] }
  0xcb   :  { %v707_v55 = vadd.f32 %v705_v7, %v701_v15  ;;  %v593_v7 = vsub.f32 %v529_v38, %v561_v39  ;;  %v497_v15 = vand.u32 2147483647, %v465_v54  ;;  %v595_v38 = vsub.f32 %v531_v9, %v563_v51  ;;  %v568_v39 = vld [vmem:[#allocation13 + $0x80] sm:$0xff]  ;;  %v535_v54 = vld [vmem:[#allocation10 + $0x78] sm:$0xff] }
  0xcc   :  { %1118 = vmatpush.msk.msrb.mxu3 %vm1672_vm13, %v1419_v31  ;;  %v504_v4 = vand.u32 2147483647, %v472_v2  ;;  %v572_v43 = vld [vmem:[#allocation13 + $0xa0] sm:$0xff]  ;;  %v501_v50 = vand.u32 2147483647, %v469_v8  ;;  %v414_v2 = vld [vmem:[#allocation9 + $0xb0] sm:$0xff]  ;;  %v599_v51 = vsub.f32 %v535_v54, %v567_v56 }
  0xcd   :  { %v713_v60 = vadd.f32 %v711_v52, %v707_v55  ;;  %v439_v52 = vld [vmem:[#allocation12 + $0x78] sm:$0xff] }
  0xce   :  { %1120 = vmatpush.msk.msrb.mxu3 %vm1685_vm2, %v1419_v31 }
  0xd0   :  { %1122 = vmatpush.msk.msrb.mxu3 %vm1698_vm10, %v1419_v31 }
  0xd2   :  { %1124 = vmatpush.msk.msrb.mxu3 %vm2079_vm3, %v1419_v31 }
  0xd4   :  { %1126 = vmatpush.msk.msrb.mxu3 %vm2080_vm6, %v1419_v31 }
  0xd6   :  { %1128 = vmatpush.msk.msrb.mxu3 %vm2081_vm9, %v1419_v31 }
  0xd8   :  { %1130 = vmatpush.msk.msrb.mxu3 %vm1750_vm1, %v1419_v31 }
  0xda   :  { %1132 = vmatpush.msk.msrb.mxu3 %vm1762_vm5, %v1419_v31 }
  0xdc   :  { %1134 = vmatpush.msk.msrb.mxu3 %vm1779_vm14, %v1419_v31  ;;  %v664_v31 = vmul.f32 %v1821_v29, %v491_v3  ;;  %v719_v3 = vadd.f32 %v717_v27, %v713_v60  ;;  %v471_v27 = vsub.f32 %v1936_v6, %v439_v52 }
  0xdd   :  { %362 = vmatmul.f32.vlgmr.msrb.gmra.mxu3 %v1545_v12  ;;  %v591_v12 = vsub.f32 %v527_v20, %v559_v23  ;;  %v474_v20 = vsub.f32 %v410_v59, %v442_v61  ;;  %v536_v23 = vld [vmem:[#allocation10 + $0x80] sm:$0xff]  ;;  %v700_v61 = vmul.f32 %v1880_v26, %v497_v15 }
  0xde   :  { %v666_v58 = vadd.f32 %v664_v31, %v660_v41  ;;  %v725_v1 = vadd.f32 %v723_v17, %v719_v3  ;;  %v444_v31 = vld [vmem:[#allocation12 + $0xa0] sm:$0xff]  ;;  %v625_v17 = vand.u32 2147483647, %v593_v7  ;;  %v600_v47 = vsub.f32 %v536_v23, %v568_v39  ;;  %v446_v3 = vld [vmem:[#allocation12 + $0xb0] sm:$0xff] }
  0xdf   :  { %v623_v11 = vand.u32 2147483647, %v591_v12  ;;  %v570_v12 = vld [vmem:[#allocation13 + $0x90] sm:$0xff]  ;;  %v476_v57 = vsub.f32 %v412_v34, %v444_v31  ;;  %v448_v15 = vld [vmem:[#allocation12 + $0xc0] sm:$0xff]  ;;  %v712_v34 = vmul.f32 %v1887_v30, %v499_v19 }
  0xe0   :  { %v672_v13 = vadd.f32 %v670_v42, %v666_v58  ;;  %v731_v55 = vadd.f32 %v729_v63, %v725_v1  ;;  %v540_v42 = vld [vmem:[#allocation10 + $0xa0] sm:$0xff]  ;;  %v602_v60 = vsub.f32 %v538_v53, %v570_v12  ;;  %v506_v58 = vand.u32 2147483647, %v474_v20  ;;  %v418_v31 = vld [vmem:[#allocation9 + $0xd0] sm:$0xff] }
  0xe1   :  { %v694_v41 = vmul.f32 %v1873_v21, %v623_v11  ;;  %v824_v63 = vmul.f32 %v1812_v22, %v504_v4  ;;  %v604_v7 = vsub.f32 %v540_v42, %v572_v43  ;;  %v632_v52 = vand.u32 2147483647, %v600_v47  ;;  %v416_v1 = vld [vmem:[#allocation9 + $0xc0] sm:$0xff]  ;;  %v450_v4 = vld [vmem:[#allocation12 + $0xd0] sm:$0xff]  ;;  %v409_v47 = vld [vmem:[#allocation9 + $0x88] sm:$0xff] }
  0xe2   :  { %v678_v32 = vadd.f32 %v676_v16, %v672_v13  ;;  %v737_v46 = vadd.f32 %v735_v35, %v731_v55  ;;  %v597_v16 = vsub.f32 %v533_v25, %v565_v36  ;;  %v634_v9 = vand.u32 2147483647, %v602_v60  ;;  %v542_v13 = vld [vmem:[#allocation10 + $0xb0] sm:$0xff]  ;;  %v544_v55 = vld [vmem:[#allocation10 + $0xc0] sm:$0xff] }
  0xe3   :  { %v627_v35 = vand.u32 2147483647, %v595_v38  ;;  %v706_v11 = vmul.f32 %v1895_v44, %v625_v17  ;;  %v478_v20 = vsub.f32 %v414_v2, %v446_v3  ;;  %v508_v23 = vand.u32 2147483647, %v476_v57  ;;  %v576_v36 = vld [vmem:[#allocation13 + $0xc0] sm:$0xff]  ;;  %v1957_v19 = vld [vmem:[#allocation9 + $0xf0] sm:$0xff] }
  0xe4   :  { %v684_v40 = vadd.f32 %v682_v14, %v678_v32  ;;  %v1945_v6 = vadd.f32 %v741_v24, %v737_v46  ;;  %v574_v14 = vld [vmem:[#allocation13 + $0xb0] sm:$0xff]  ;;  %v830_v53 = vmul.f32 %v1819_v28, %v632_v52  ;;  %v836_v24 = vmul.f32 %v1821_v29, %v506_v58  ;;  %v1955_v46 = vld [vmem:[#allocation9 + $0xe0] sm:$0xff]  ;;  %v411_v3 = vld [vmem:[#allocation9 + $0x98] sm:$0xff] }
  0xe5   :  { %v503_v25 = vand.u32 2147483647, %v471_v27  ;;  %v629_v32 = vand.u32 2147483647, %v597_v16  ;;  %v606_v38 = vsub.f32 %v542_v13, %v574_v14  ;;  %v636_v17 = vand.u32 2147483647, %v604_v7 }
  0xe6   :  { %v690_v59 = vadd.f32 %v688_v33, %v684_v40  ;;  %745 = vxpose.xlu1.b32.start [1/2] (short) (narrow) %v1945_v6, 16  ;;  %v832_v39 = vadd.f32 %v830_v53, %v824_v63  ;;  %v842_v12 = vmul.f32 %v1832_v37, %v634_v9  ;;  %v631_v40 = vand.u32 2147483647, %v599_v51  ;;  %v441_v27 = vld [vmem:[#allocation12 + $0x88] sm:$0xff]  ;;  %v443_v63 = vld [vmem:[#allocation12 + $0x98] sm:$0xff]  ;;  %v1961_v7 = vld [vmem:[#allocation12 + $0xf0] sm:$0xff] }
  0xe7   :  { %v718_v42 = vmul.f32 %v1898_v45, %v627_v35  ;;  %v480_v43 = vsub.f32 %v416_v1, %v448_v15  ;;  %v724_v60 = vmul.f32 %v1905_v62, %v501_v50  ;;  %v510_v54 = vand.u32 2147483647, %v478_v20  ;;  %v546_v52 = vld [vmem:[#allocation10 + $0xd0] sm:$0xff]  ;;  %v548_v20 = vld [vmem:[#allocation10 + $0xe0] sm:$0xff] }
  0xe8   :  { %v696_v8 = vadd.f32 %v694_v41, %v690_v59  ;;  %v838_v56 = vadd.f32 %v836_v24, %v832_v39  ;;  %v848_v57 = vmul.f32 %v1844_v48, %v508_v23  ;;  %v736_v16 = vmul.f32 %v1908_v49, %v503_v25  ;;  %v452_v59 = vld [vmem:[#allocation12 + $0xe0] sm:$0xff]  ;;  %v578_v50 = vld [vmem:[#allocation13 + $0xd0] sm:$0xff]  ;;  %v537_v25 = vld [vmem:[#allocation10 + $0x88] sm:$0xff] }
  0xe9   :  { %v608_v2 = vsub.f32 %v544_v55, %v576_v36  ;;  %v638_v9 = vand.u32 2147483647, %v606_v38  ;;  %v854_v35 = vmul.f32 %v1853_v0, %v636_v17  ;;  %v730_v13 = vmul.f32 %v1922_v18, %v629_v32  ;;  %v413_v32 = vld [vmem:[#allocation9 + $0xa8] sm:$0xff] }
  0xea   :  { %v702_v33 = vadd.f32 %v700_v61, %v696_v8  ;;  %v482_v61 = vsub.f32 %v418_v31, %v450_v4  ;;  %v844_v51 = vadd.f32 %v842_v12, %v838_v56  ;;  %v473_v8 = vsub.f32 %v409_v47, %v441_v27  ;;  %v580_v4 = vld [vmem:[#allocation13 + $0xe0] sm:$0xff]  ;;  %v445_v38 = vld [vmem:[#allocation12 + $0xa8] sm:$0xff] }
  0xeb   :  { %v742_v14 = vmul.f32 %v1934_v5, %v631_v40  ;;  %v512_v1 = vand.u32 2147483647, %v480_v43  ;;  %v484_v15 = vsub.f32 %v1955_v46, %v452_v59  ;;  %v860_v53 = vmul.f32 %v1864_v10, %v510_v54  ;;  %v541_v27 = vld [vmem:[#allocation10 + $0xa8] sm:$0xff] }
  0xec   :  { %v708_v41 = vadd.f32 %v706_v11, %v702_v33  ;;  %v850_v23 = vadd.f32 %v848_v57, %v844_v51  ;;  %v475_v24 = vsub.f32 %v411_v3, %v443_v63  ;;  %v539_v33 = vld [vmem:[#allocation10 + $0x98] sm:$0xff]  ;;  %v486_v31 = vsub.f32 %v1957_v19, %v1961_v7  ;;  %v550_v3 = vld [vmem:[#allocation10 + $0xf0] sm:$0xff] }
  0xed   :  { %v610_v55 = vsub.f32 %v546_v52, %v578_v50  ;;  %v640_v36 = vand.u32 2147483647, %v608_v2  ;;  %v514_v17 = vand.u32 2147483647, %v482_v61  ;;  %v866_v12 = vmul.f32 %v1873_v21, %v638_v9  ;;  %v415_v57 = vld [vmem:[#allocation9 + $0xb8] sm:$0xff]  ;;  %v582_v50 = vld [vmem:[#allocation13 + $0xf0] sm:$0xff] }
  0xee   :  { %v714_v58 = vadd.f32 %v712_v34, %v708_v41  ;;  %v856_v39 = vadd.f32 %v854_v35, %v850_v23  ;;  %v505_v40 = vand.u32 2147483647, %v473_v8  ;;  %v569_v41 = vld [vmem:[#allocation13 + $0x88] sm:$0xff]  ;;  %v872_v47 = vmul.f32 %v1880_v26, %v512_v1  ;;  %v543_v51 = vld [vmem:[#allocation10 + $0xb8] sm:$0xff] }
  0xef   :  { %v601_v46 = vsub.f32 %v537_v25, %v569_v41  ;;  %v612_v19 = vsub.f32 %v548_v20, %v580_v4  ;;  %v477_v59 = vsub.f32 %v413_v32, %v445_v38  ;;  %v507_v2 = vand.u32 2147483647, %v475_v24  ;;  %v575_v35 = vld [vmem:[#allocation13 + $0xb8] sm:$0xff]  ;;  %v417_v24 = vld [vmem:[#allocation9 + $0xc8] sm:$0xff] }
  0xf0   :  { %v720_v11 = vadd.f32 %v718_v42, %v714_v58  ;;  %v571_v42 = vld [vmem:[#allocation13 + $0x98] sm:$0xff]  ;;  %v862_v56 = vadd.f32 %v860_v53, %v856_v39  ;;  %v642_v63 = vand.u32 2147483647, %v610_v55  ;;  %v878_v7 = vmul.f32 %v1895_v44, %v640_v36  ;;  %v449_v25 = vld [vmem:[#allocation12 + $0xc8] sm:$0xff] }
  0xf1   :  { %v603_v54 = vsub.f32 %v539_v33, %v571_v42  ;;  %v447_v58 = vld [vmem:[#allocation12 + $0xb8] sm:$0xff]  ;;  %v633_v52 = vand.u32 2147483647, %v601_v46  ;;  %v516_v20 = vand.u32 2147483647, %v484_v15  ;;  %v884_v23 = vmul.f32 %v1887_v30, %v514_v17  ;;  %v545_v15 = vld [vmem:[#allocation10 + $0xc8] sm:$0xff] }
  0xf2   :  { %v726_v34 = vadd.f32 %v724_v60, %v720_v11  ;;  %v573_v60 = vld [vmem:[#allocation13 + $0xa8] sm:$0xff]  ;;  %v868_v9 = vadd.f32 %v866_v12, %v862_v56  ;;  %v479_v53 = vsub.f32 %v415_v57, %v447_v58  ;;  %v509_v33 = vand.u32 2147483647, %v477_v59  ;;  %v547_v57 = vld [vmem:[#allocation10 + $0xd8] sm:$0xff] }
  0xf3   :  { %v605_v8 = vsub.f32 %v541_v27, %v573_v60  ;;  %v635_v11 = vand.u32 2147483647, %v603_v54  ;;  %v837_v4 = vmul.f32 %v1821_v29, %v507_v2  ;;  %v614_v55 = vsub.f32 %v550_v3, %v582_v50  ;;  %v577_v38 = vld [vmem:[#allocation13 + $0xc8] sm:$0xff]  ;;  %v419_v29 = vld [vmem:[#allocation9 + $0xd8] sm:$0xff] }
  0xf4   :  { %v732_v43 = vadd.f32 %v730_v13, %v726_v34  ;;  %v825_v13 = vmul.f32 %v1812_v22, %v505_v40  ;;  %v831_v34 = vmul.f32 %v1819_v28, %v633_v52  ;;  %v644_v36 = vand.u32 2147483647, %v612_v19  ;;  %v579_v58 = vld [vmem:[#allocation13 + $0xd8] sm:$0xff] }
  0xf5   :  { %v890_v22 = vmul.f32 %v1898_v45, %v642_v63  ;;  %v637_v17 = vand.u32 2147483647, %v605_v8  ;;  %v843_v12 = vmul.f32 %v1832_v37, %v635_v11  ;;  %v518_v40 = vand.u32 2147483647, %v486_v31  ;;  %v421_v63 = vld [vmem:[#allocation9 + $0xe8] sm:$0xff] }
  0xf6   :  { %v738_v61 = vadd.f32 %v736_v16, %v732_v43  ;;  %v874_v16 = vadd.f32 %v872_v47, %v868_v9  ;;  %v833_v39 = vadd.f32 %v831_v34, %v825_v13  ;;  %v896_v41 = vmul.f32 %v1905_v62, %v516_v20  ;;  %v451_v43 = vld [vmem:[#allocation12 + $0xd8] sm:$0xff]  ;;  %v549_v8 = vld [vmem:[#allocation10 + $0xe8] sm:$0xff] }
  0xf7   :  { %v481_v28 = vsub.f32 %v417_v24, %v449_v25  ;;  %v511_v47 = vand.u32 2147483647, %v479_v53  ;;  %v849_v60 = vmul.f32 %v1844_v48, %v509_v33  ;;  %v646_v46 = vand.u32 2147483647, %v614_v55  ;;  %v581_v11 = vld [vmem:[#allocation13 + $0xe8] sm:$0xff]  ;;  %v423_v33 = vld [vmem:[#allocation9 + $0xf8] sm:$0xff] }
  0xf8   :  { %v1974_v1 = vadd.f32 %v742_v14, %v738_v61  ;;  %v607_v14 = vsub.f32 %v543_v51, %v575_v35  ;;  %v880_v32 = vadd.f32 %v878_v7, %v874_v16  ;;  %v839_v27 = vadd.f32 %v837_v4, %v833_v39  ;;  %v453_v7 = vld [vmem:[#allocation12 + $0xe8] sm:$0xff]  ;;  %v455_v34 = vld [vmem:[#allocation12 + $0xf8] sm:$0xff] }
  0xf9   :  { %v902_v54 = vmul.f32 %v1922_v18, %v644_v36  ;;  %v609_v19 = vsub.f32 %v545_v15, %v577_v38  ;;  %v855_v31 = vmul.f32 %v1853_v0, %v637_v17  ;;  %v908_v2 = vmul.f32 %v1908_v49, %v518_v40 }
  0xfa   :  { %746 = vxpose.xlu1.b32.end [2/2] (short) (narrow) %v1974_v1, 16  ;;  %v886_v42 = vadd.f32 %v884_v23, %v880_v32  ;;  %v639_v59 = vand.u32 2147483647, %v607_v14  ;;  %v845_v37 = vadd.f32 %v843_v12, %v839_v27  ;;  %v483_v61 = vsub.f32 %v419_v29, %v451_v43  ;;  %v551_v14 = vld [vmem:[#allocation10 + $0xf8] sm:$0xff] }
  0xfb   :  { %v513_v52 = vand.u32 2147483647, %v481_v28  ;;  %v861_v48 = vmul.f32 %v1864_v10, %v511_v47  ;;  %v914_v9 = vmul.f32 %v1934_v5, %v646_v46  ;;  %v611_v51 = vsub.f32 %v547_v57, %v579_v58  ;;  %v583_v32 = vld [vmem:[#allocation13 + $0xf8] sm:$0xff]  ;;  %v354_v57 = vpop.f32.mrf.mxu1 }
  0xfc   :  { %v892_v56 = vadd.f32 %v890_v22, %v886_v42  ;;  %v851_v50 = vadd.f32 %v849_v60, %v845_v37  ;;  %v641_v13 = vand.u32 2147483647, %v609_v19  ;;  %v867_v0 = vmul.f32 %v1873_v21, %v639_v59  ;;  %v224_v19 = vpop.permute.xlu0 %223 }
  0xfd   :  { %v485_v23 = vsub.f32 %v421_v63, %v453_v7  ;;  %v515_v16 = vand.u32 2147483647, %v483_v61  ;;  %v873_v25 = vmul.f32 %v1880_v26, %v513_v52  ;;  %v613_v4 = vsub.f32 %v549_v8, %v581_v11 }
  0xfe   :  { %v898_v3 = vadd.f32 %v896_v41, %v892_v56  ;;  %v857_v20 = vadd.f32 %v855_v31, %v851_v50  ;;  %v643_v55 = vand.u32 2147483647, %v611_v51  ;;  %v879_v22 = vmul.f32 %v1895_v44, %v641_v13 }
  0xff   :  { %v487_v21 = vsub.f32 %v423_v33, %v455_v34  ;;  %v517_v15 = vand.u32 2147483647, %v485_v23  ;;  %v885_v17 = vmul.f32 %v1887_v30, %v515_v16  ;;  %v615_v39 = vsub.f32 %v551_v14, %v583_v32 }
 0x100   :  { %v904_v35 = vadd.f32 %v902_v54, %v898_v3  ;;  %v863_v24 = vadd.f32 %v861_v48, %v857_v20  ;;  %v645_v26 = vand.u32 2147483647, %v613_v4  ;;  %v891_v40 = vmul.f32 %v1898_v45, %v643_v55 }
 0x101   :  { %v519_v41 = vand.u32 2147483647, %v487_v21  ;;  %v897_v42 = vmul.f32 %v1905_v62, %v517_v15  ;;  %v647_v29 = vand.u32 2147483647, %v615_v39  ;;  %v360_v62 = vpop.f32.mrf.mxu2 }
 0x102   :  { %v910_v53 = vadd.f32 %v908_v2, %v904_v35  ;;  %v869_v36 = vadd.f32 %v867_v0, %v863_v24  ;;  %v903_v43 = vmul.f32 %v1922_v18, %v645_v26  ;;  %v779_v18 = vstv %s2039_s12 }
 0x103   :  { %v909_v27 = vmul.f32 %v1908_v49, %v519_v41  ;;  %v915_v46 = vmul.f32 %v1934_v5, %v647_v29  ;;  %v357_v59 = vpop.f32.mrf.mxu1  ;;  %v366_v49 = vld [vmem:[%s2033_s6] sm:$0x3]  ;;  %s1421_s6 = smov [#allocation17]  }
 0x104   :  { %v1991_v10 = vadd.f32 %v914_v9, %v910_v53  ;;  %v875_v38 = vadd.f32 %v873_v25, %v869_v36  ;;  %s1011_s12 = sshll.u32 %s1421_s6, 4  ;;  %s1012_s12 = int_to_ptr.vmem [resolvable:$true] %s1011_s12 }
 0x106   :  { %918 = vxpose.xlu2.b32.start [1/2] (short) (narrow) %v1991_v10, 16  ;;  %v881_v12 = vadd.f32 %v879_v22, %v875_v38 }
 0x108   :  { %v887_v28 = vadd.f32 %v885_v17, %v881_v12 }
 0x10a   :  { %v893_v44 = vadd.f32 %v891_v40, %v887_v28 }
 0x10c   :  { %v899_v47 = vadd.f32 %v897_v42, %v893_v44 }
 0x10e   :  { %v905_v60 = vadd.f32 %v903_v43, %v899_v47 }
 0x110   :  { %v911_v30 = vadd.f32 %v909_v27, %v905_v60 }
 0x112   :  { %v917_v54 = vadd.f32 %v915_v46, %v911_v30 }
 0x114   :  { %919 = vxpose.xlu2.b32.end [2/2] (short) (narrow) %v917_v54, 16 }
 0x140   :  { %v247_v56 = vpop.f32.mrf.mxu3 }
 0x141   :  { %v248_v45 = vadd.f32 %v247_v56, %v224_v19 }
 0x143   :  { %250 = vst [vmem:[#allocation16] sm:$0x7] %v248_v45 }
 0x144   :  { %1005 = dma.vmem_to_hbm [thread:$0]  %s1001_s2, 64, %s1003_s24, [#allocation5]  }
 0x160   :  { %v363_v58 = vpop.f32.mrf.mxu3 }
 0x161   :  { %382 = vmatpush.msrb.mxu0 %v363_v58 }
 0x163   :  { %383 = vmatpush.msrb.mxu0 %v360_v62 }
 0x165   :  { %384 = vmatpush.msrb.mxu0 %v357_v59 }
 0x167   :  { %385 = vmatpush.msrb.mxu0 %v354_v57 }
 0x168   :  { %1068 = vmatmul.msk.f32.vlgmr.msrb.gmra.mxu0 %vm2082_vm12, %v366_v49 }
 0x196   :  { %v761_v5 = vpop.trf.xlu1 }
 0x197   :  { %v777_v37 = vadd.f32 %v761_v5, %v1945_v6 }
 0x199   :  { %v780_v31 = vadd.f32 %v779_v18, %v777_v37 }
 0x19b   :  { %v1084_v2 = vmul.f32 -1.442695, %v780_v31 }
 0x19d   :  { %1151 = vpow2.f32 %v1084_v2 }
 0x19e   :  { %v762_v61 = vpop.trf.xlu1 }
 0x19f   :  { %v778_v3 = vadd.f32 %v762_v61, %v1974_v1 }
 0x1a1   :  { %v781_v63 = vadd.f32 %v779_v18, %v778_v3 }
 0x1a3   :  { %v1152_v7 = vpop.eup %1151  ;;  %v1085_v52 = vmul.f32 -1.442695, %v781_v63 }
 0x1a4   :  { %v788_v50 = vadd.f32 1.0, %v1152_v7 }
 0x1a5   :  { %1153 = vpow2.f32 %v1085_v52  ;;  %v934_v48 = vpop.trf.xlu2 }
 0x1a6   :  { %1155 = vrcp.f32 %v788_v50  ;;  %v950_v51 = vadd.f32 %v934_v48, %v1991_v10  ;;  %vm795_vm15 = vweird.f32 %v788_v50  ;;  %v801_v13 = vand.u32 2147483648, %v788_v50 }
 0x1a7   :  { %v799_v1 = vand.u32 2147483647, %v788_v50 }
 0x1a8   :  { %v952_v11 = vadd.f32 %v950_v51, %v779_v18  ;;  %v802_v16 = vor.u32 1.1754944e-38, %v801_v13 }
 0x1a9   :  { %vm800_vm13 = vcmp.eq.f32.partialorder %v799_v1, 8.507059e+37 }
 0x1aa   :  { %v1101_v20 = vmul.f32 -1.442695, %v952_v11 }
 0x1ab   :  { %v1154_v9 = vpop.eup %1153 }
 0x1ac   :  { %v1156_v35 = vpop.eup %1155  ;;  %v789_v8 = vadd.f32 1.0, %v1154_v9 }
 0x1ad   :  { %v791_v6 = vmul.f32 %v1156_v35, %v788_v50  ;;  %vm796_vm4 = vweird.f32 %v1156_v35  ;;  %v935_v53 = vpop.trf.xlu2 }
 0x1ae   :  { %1157 = vrcp.f32 %v789_v8  ;;  %vm797_vm8 = vmor %vm795_vm15, %vm796_vm4  ;;  %v951_v24 = vadd.f32 %v935_v53, %v917_v54  ;;  %vm810_vm2 = vweird.f32 %v789_v8  ;;  %v816_v36 = vand.u32 2147483648, %v789_v8 }
 0x1af   :  { %v792_v0 = vsub.f32 1.0, %v791_v6  ;;  %1159 = vpow2.f32 %v1101_v20  ;;  %v814_v21 = vand.u32 2147483647, %v789_v8  ;;  %vm390_vm4 = vcmask 9216  }
 0x1b0   :  { %v953_v34 = vadd.f32 %v951_v24, %v779_v18  ;;  %v817_v17 = vor.u32 1.1754944e-38, %v816_v36 }
 0x1b1   :  { %v793_v23 = vmul.f32 %v1156_v35, %v792_v0  ;;  %vm815_vm5 = vcmp.eq.f32.partialorder %v814_v21, 8.507059e+37 }
 0x1b2   :  { %v1102_v14 = vmul.f32 -1.442695, %v953_v34 }
 0x1b3   :  { %v794_v25 = vadd.f32 %v1156_v35, %v793_v23 }
 0x1b4   :  { %v1158_v33 = vpop.eup %1157  ;;  %1161 = vpow2.f32 %v1102_v14 }
 0x1b5   :  { %v806_v4 = vmul.f32 %v1158_v33, %v789_v8  ;;  %v798_v10 = vsel %vm797_vm8, %v1156_v35, %v794_v25  ;;  %v1160_v22 = vpop.eup %1159  ;;  %vm811_vm10 = vweird.f32 %v1158_v33 }
 0x1b6   :  { %v803_v55 = vsel %vm800_vm13, %v802_v16, %v798_v10  ;;  %v960_v15 = vadd.f32 1.0, %v1160_v22  ;;  %vm812_vm1 = vmor %vm810_vm2, %vm811_vm10 }
 0x1b7   :  { %v807_v32 = vsub.f32 1.0, %v806_v4  ;;  %820 = vst.msk [vmem:[#allocation19] sm:$0xff] %vm226_vm0, %v803_v55 }
 0x1b8   :  { %1163 = vrcp.f32 %v960_v15  ;;  %v973_v29 = vand.u32 2147483648, %v960_v15  ;;  %vm967_vm7 = vweird.f32 %v960_v15  ;;  %v971_v43 = vand.u32 2147483647, %v960_v15 }
 0x1b9   :  { %v808_v38 = vmul.f32 %v1158_v33, %v807_v32 }
 0x1ba   :  { %v1162_v40 = vpop.eup %1161  ;;  %v974_v27 = vor.u32 1.1754944e-38, %v973_v29  ;;  %vm972_vm3 = vcmp.eq.f32.partialorder %v971_v43, 8.507059e+37 }
 0x1bb   :  { %v809_v39 = vadd.f32 %v1158_v33, %v808_v38  ;;  %v961_v28 = vadd.f32 1.0, %v1162_v40 }
 0x1bd   :  { %v813_v26 = vsel %vm812_vm1, %v1158_v33, %v809_v39  ;;  %1165 = vrcp.f32 %v961_v28  ;;  %v988_v56 = vand.u32 2147483648, %v961_v28  ;;  %vm982_vm6 = vweird.f32 %v961_v28 }
 0x1be   :  { %v818_v12 = vsel %vm815_vm5, %v817_v17, %v813_v26  ;;  %v1164_v41 = vpop.eup %1163  ;;  %v986_v57 = vand.u32 2147483647, %v961_v28 }
 0x1bf   :  { %821 = vst.msk [vmem:[#allocation19 + $0x8] sm:$0xff] %vm226_vm0, %v818_v12  ;;  %v963_v42 = vmul.f32 %v1164_v41, %v960_v15  ;;  %vm968_vm11 = vweird.f32 %v1164_v41  ;;  %v989_v62 = vor.u32 1.1754944e-38, %v988_v56 }
 0x1c0   :  { %vm969_vm14 = vmor %vm967_vm7, %vm968_vm11  ;;  %vm987_vm15 = vcmp.eq.f32.partialorder %v986_v57, 8.507059e+37 }
 0x1c1   :  { %v964_v44 = vsub.f32 1.0, %v963_v42 }
 0x1c3   :  { %v965_v47 = vmul.f32 %v1164_v41, %v964_v44  ;;  %v1166_v46 = vpop.eup %1165 }
 0x1c4   :  { %v978_v30 = vmul.f32 %v1166_v46, %v961_v28  ;;  %vm983_vm9 = vweird.f32 %v1166_v46 }
 0x1c5   :  { %v966_v60 = vadd.f32 %v1164_v41, %v965_v47  ;;  %vm984_vm12 = vmor %vm982_vm6, %vm983_vm9 }
 0x1c6   :  { %v979_v45 = vsub.f32 1.0, %v978_v30 }
 0x1c7   :  { %v970_v54 = vsel %vm969_vm14, %v1164_v41, %v966_v60 }
 0x1c8   :  { %v975_v19 = vsel %vm972_vm3, %v974_v27, %v970_v54  ;;  %v980_v58 = vmul.f32 %v1166_v46, %v979_v45 }
 0x1c9   :  { %993 = vst.msk [vmem:[#allocation19 + $0x10] sm:$0xff] %vm226_vm0, %v975_v19 }
 0x1ca   :  { %v981_v59 = vadd.f32 %v1166_v46, %v980_v58 }
 0x1cc   :  { %v985_v49 = vsel %vm984_vm12, %v1166_v46, %v981_v59 }
 0x1cd   :  { %v990_v18 = vsel %vm987_vm15, %v989_v62, %v985_v49 }
 0x1ce   :  { %994 = vst.msk [vmem:[#allocation19 + $0x18] sm:$0xff] %vm226_vm0, %v990_v18 }
 0x1e5   :  { %v387_v5 = vpop.f32.mrf.mxu0 }
 0x1e6   :  { %391 = vst.msk [vmem:[#allocation17] sm:$0x3] %vm390_vm4, %v387_v5 }
 0x1e7   :  { %1016 = dma.vmem_to_hbm [thread:$0]  %s1012_s12, 32, %s1014_s25, [#allocation18]  }
 0x1e8   :  { %1029 = dma.vmem_to_hbm [thread:$0]  %s1022_s29, 512, %s1024_s9, [#allocation18], %s1410_s26, %s1410_s26, %s1411_s27  }
 0x1e9   :  { %1405 = dma.done.wait [#allocation5], 64  }
 0x1ea   :  { %1406 = vsyncadd [#allocation5], 4294967232 }
 0x1eb   :  { %1407 = dma.done.wait [#allocation18], 544  }
 0x1ec   :  { %1408 = vsyncadd [#allocation18], 4294966752 }
 0x1ed   :  { %1042 = vsyncpa [#allocation4], 1 }
 0x1ee   :  { %1043 = vsyncpa [#allocation8], 1 }
 0x1ef   :  { %1044 = vsyncpa [#allocation11], 1 }
 0x1f0   :  { %1045 = vsyncpa [#allocation14], 1 }
 0x1f1   :  { %1046 = vsyncpa [#allocation5], 1 }
 0x1f2   :  { %1047 = vsyncpa [#allocation18], 1 }
 0x1f3   :  { %1048 = vsyncpa [#allocation6], 1 }

</bundles_post_ra>
